<compile_context>
chip_gen: v5e
topology: v5e:2x2
jax: 0.10.0
libtpu: 0.0.40
codegen_flags: <defaults>
</compile_context>

<pallas_src>
import functools
import math

import jax
import jax.numpy as jnp
from jax.experimental import pallas as pl
from jax.experimental.pallas import tpu as pltpu

LANE = 128


# ----------------------------- in-kernel helpers -----------------------------

def _layernorm(x, g, b, eps=1e-12):
    mu = jnp.mean(x, axis=-1, keepdims=True)
    var = jnp.mean(jnp.square(x - mu), axis=-1, keepdims=True)
    return (x - mu) * jax.lax.rsqrt(var + eps) * g + b


# ------------------------------ fused Pallas kernel ---------------------------

def fused_encoder_kernel(x_hbm_ref, mask_ref, emb_g_ref, emb_b_ref,
                         wqkv_ref, bqkv_ref, wo_ref, w1_ref, b1_ref, w2_ref, vecs_ref,
                         head_w_ref, head_b_ref,
                         out_ref, x_scr, copy_sem, *, num_heads, batch_tile):
    b = pl.program_id(0)            # batch tile (parallel)
    l = pl.program_id(1)            # encoder layer (arbitrary, activation carried in x_scr)
    n_layers = pl.num_programs(1)

    TBS, H = x_scr.shape            # TBS = batch_tile * seq_len
    S = TBS // batch_tile
    nh = num_heads
    hd = H // nh
    bf16 = jnp.bfloat16

    # ---- layer 0: pull this batch tile's embeddings from HBM, embedding LayerNorm ----
    @pl.when(l == 0)
    def _():
        start = pl.multiple_of(b * TBS, TBS)
        cp = pltpu.make_async_copy(x_hbm_ref.at[pl.ds(start, TBS)], x_scr, copy_sem)
        cp.start()
        cp.wait()
        x_scr[...] = _layernorm(x_scr[...], emb_g_ref[...], emb_b_ref[...])

    x = x_scr[...]                                  # (TBS, H) f32, resident across layers
    x_bf = x.astype(bf16)

    # packed per-layer vectors: rows = [bo, b2, ln1_g, ln1_b, ln2_g, ln2_b]
    vecs = vecs_ref[0]
    bo, b2 = vecs[0:1, :], vecs[1:2, :]
    ln1g, ln1b = vecs[2:3, :], vecs[3:4, :]
    ln2g, ln2b = vecs[4:5, :], vecs[5:6, :]

    # ---- fused QKV projection (1/sqrt(hd) already folded into the Q columns/bias) ----
    qkv = jnp.dot(x_bf, wqkv_ref[0], preferred_element_type=jnp.float32) + bqkv_ref[0]
    q = qkv[:, :H]
    k = qkv[:, H:2 * H]
    v = qkv[:, 2 * H:]

    # ---- head-batched self-attention (batch_tile == 1: rows are the sequence) ----
    qh = pltpu.einshape("mhd->hmd", q.reshape(S, nh, hd)).astype(bf16)   # (nh, S, hd)
    kh = pltpu.einshape("mhd->hmd", k.reshape(S, nh, hd)).astype(bf16)
    vh = pltpu.einshape("mhd->hmd", v.reshape(S, nh, hd)).astype(bf16)

    sc = jnp.einsum('hqd,hkd->hqk', qh, kh,
                    preferred_element_type=jnp.float32)                 # (nh, S, S)
    sc = sc + mask_ref[...]                         # (1, 1, S) additive key mask, added once
    sc = sc - jnp.max(sc, axis=-1, keepdims=True)
    p = jnp.exp(sc)
    p = p * pl.reciprocal(jnp.sum(p, axis=-1, keepdims=True), approx=True)
    ctx_h = jnp.einsum('hqk,hkd->hqd', p.astype(bf16), vh,
                       preferred_element_type=jnp.float32)              # (nh, S, hd)
    ctx = pltpu.einshape("hmd->mhd", ctx_h).reshape(TBS, H).astype(bf16)

    attn = jnp.dot(ctx, wo_ref[0], preferred_element_type=jnp.float32) + bo
    x1 = _layernorm(x + attn, ln1g, ln1b)

    # ---- feed-forward ----
    h1 = jnp.dot(x1.astype(bf16), w1_ref[0],
                 preferred_element_type=jnp.float32) + b1_ref[0]
    # TODO(synk): HF BERT / nn.GELU default is exact erf GELU; tanh approximation used here.
    h1 = jax.nn.gelu(h1, approximate=True)
    ffn = jnp.dot(h1.astype(bf16), w2_ref[0],
                  preferred_element_type=jnp.float32) + b2
    x2 = _layernorm(x1 + ffn, ln2g, ln2b)

    # carry the activation to the next layer; skip the store on the final layer
    @pl.when(l < n_layers - 1)
    def _():
        x_scr[...] = x2

    # ---- last layer: CLS pooling -> dropout (identity in eval) -> lane-dense head ----
    @pl.when(l == n_layers - 1)
    def _():
        # TODO(synk): nn.Dropout(0.2) is identity at inference; training would use
        # pltpu.prng_seed + pltpu.prng_random_bits here.  No BERT pooler (spec uses
        # last_hidden_state[:, 0] directly).
        cls = x2.reshape(batch_tile, S, H)[:, 0, :]                     # (tb, H)
        logits = jnp.dot(cls.astype(bf16), head_w_ref[...],
                         preferred_element_type=jnp.float32) + head_b_ref[...]
        out_ref[...] = logits[:, None, :]            # (tb, 1, 128) lane-dense, zero-padded


# ------------------------------ pallas wrapper --------------------------------

def fused_forward_call(x_flat, add_mask, p, *, num_heads, seq_len, batch_tile=1):
    BS, H = x_flat.shape
    B = BS // seq_len
    # TODO(synk): batch_tile > 1 requires merging batch into the head-batched einsum.
    assert batch_tile == 1 and B % batch_tile == 0
    num_layers = p["wqkv"].shape[0]
    L_pad = p["head_w"].shape[1]
    nb = B // batch_tile

    layer_inputs = [p["wqkv"], p["bqkv"], p["wo"], p["w1"], p["b1"], p["w2"], p["vecs"]]

    def const_spec(shape):
        # whole array, same block every grid step -> fetched once, stays resident
        n = len(shape)
        return pl.BlockSpec(shape, lambda b, l, _n=n: (0,) * _n)

    def layer_spec(arr):
        # one layer-slice of the stacked weights per grid step (auto double-buffered)
        shape = (1,) + arr.shape[1:]
        n = len(shape)
        return pl.BlockSpec(shape, lambda b, l, _n=n: (l,) + (0,) * (_n - 1))

    in_specs = ([pl.BlockSpec(memory_space=pl.ANY),                      # embeddings stay in HBM
                 pl.BlockSpec((batch_tile, 1, seq_len), lambda b, l: (b, 0, 0)),
                 const_spec(p["emb_ln_g"].shape), const_spec(p["emb_ln_b"].shape)]
                + [layer_spec(w) for w in layer_inputs]
                + [const_spec(p["head_w"].shape), const_spec(p["head_b"].shape)])

    return pl.pallas_call(
        functools.partial(fused_encoder_kernel, num_heads=num_heads,
                          batch_tile=batch_tile),
        out_shape=jax.ShapeDtypeStruct((B, 1, L_pad), jnp.float32),
        grid=(nb, num_layers),
        in_specs=in_specs,
        out_specs=pl.BlockSpec((batch_tile, 1, L_pad), lambda b, l: (b, 0, 0)),
        scratch_shapes=[pltpu.VMEM((batch_tile * seq_len, H), jnp.float32),  # resident activation
                        pltpu.SemaphoreType.DMA],                            # embedding DMA sem
        compiler_params=pltpu.CompilerParams(
            dimension_semantics=("parallel", "arbitrary"),
            vmem_limit_bytes=32 * 1024 * 1024),
    )(x_flat, add_mask, p["emb_ln_g"], p["emb_ln_b"], *layer_inputs,
      p["head_w"], p["head_b"])


# ------------------------------ model definition ------------------------------

def init_params(key, *, vocab=100, max_seq=8, hidden=32, ffn=64,
                num_layers=2, num_heads=2, num_labels=5):
    keys = jax.random.split(key, 4 + num_layers)
    std = 0.02
    bf16 = jnp.bfloat16
    qscale = 1.0 / math.sqrt(hidden // num_heads)

    def nrm(k, shape):
        return std * jax.random.normal(k, shape, jnp.float32)

    p = {
        "word_emb": nrm(keys[0], (vocab, hidden)),
        "pos_emb":  nrm(keys[1], (max_seq, hidden)),
        "type_emb": nrm(keys[2], (2, hidden)),
        "emb_ln_g": jnp.ones((1, hidden), jnp.float32),
        "emb_ln_b": jnp.zeros((1, hidden), jnp.float32),
        "num_labels": num_labels,
        "num_heads": num_heads,
    }

    wqkv, bqkv, wo, w1, b1, w2, vecs = [], [], [], [], [], [], []
    for l in range(num_layers):
        lk = jax.random.split(keys[3 + l], 6)
        # fold the attention scale into the Q projection (weight and bias)
        wq = nrm(lk[0], (hidden, hidden)) * qscale
        wk = nrm(lk[1], (hidden, hidden))
        wv = nrm(lk[2], (hidden, hidden))
        wqkv.append(jnp.concatenate([wq, wk, wv], axis=1))              # (H, 3H)
        bqkv.append(jnp.zeros((1, 3 * hidden), jnp.float32))            # bq part pre-scaled (=0)
        wo.append(nrm(lk[3], (hidden, hidden)))
        w1.append(nrm(lk[4], (hidden, ffn)))
        b1.append(jnp.zeros((1, ffn), jnp.float32))
        w2.append(nrm(lk[5], (ffn, hidden)))
        # packed per-layer vectors: [bo, b2, ln1_g, ln1_b, ln2_g, ln2_b]
        vecs.append(jnp.stack([jnp.zeros((hidden,), jnp.float32),       # bo
                               jnp.zeros((hidden,), jnp.float32),       # b2
                               jnp.ones((hidden,), jnp.float32),        # ln1_g
                               jnp.zeros((hidden,), jnp.float32),       # ln1_b
                               jnp.ones((hidden,), jnp.float32),        # ln2_g
                               jnp.zeros((hidden,), jnp.float32)]))     # ln2_b

    p["wqkv"] = jnp.stack(wqkv).astype(bf16)
    p["bqkv"] = jnp.stack(bqkv)
    p["wo"]   = jnp.stack(wo).astype(bf16)
    p["w1"]   = jnp.stack(w1).astype(bf16)
    p["b1"]   = jnp.stack(b1)
    p["w2"]   = jnp.stack(w2).astype(bf16)
    p["vecs"] = jnp.stack(vecs)

    # classification head: xavier_uniform_ weight, zero bias, stored pre-transposed
    # (hidden, num_labels) and zero-padded to 128 lanes for lane-dense stores.
    limit = math.sqrt(6.0 / (hidden + num_labels))
    hw = jax.random.uniform(keys[3 + num_layers], (hidden, num_labels),
                            jnp.float32, minval=-limit, maxval=limit)
    L_pad = ((num_labels + LANE - 1) // LANE) * LANE
    p["head_w"] = jnp.zeros((hidden, L_pad), jnp.float32).at[:, :num_labels].set(hw).astype(bf16)
    p["head_b"] = jnp.zeros((1, L_pad), jnp.float32)
    return p


def multilabel_classifier_forward(params, input_ids, attention_mask, token_type_ids=None):
    B, S = input_ids.shape
    H = params["word_emb"].shape[1]
    if token_type_ids is None:
        token_type_ids = jnp.zeros_like(input_ids)

    # embeddings (gather is JAX glue; everything downstream runs in the fused kernel)
    x = (params["word_emb"][input_ids]
         + params["pos_emb"][None, :S, :]
         + params["type_emb"][token_type_ids]).astype(jnp.float32)
    x_flat = x.reshape(B * S, H)

    # additive attention mask: 0 for valid tokens, -1e9 for padding. shape (B, 1, S)
    add_mask = ((1.0 - attention_mask.astype(jnp.float32)) * -1e9)[:, None, :]

    logits_pad = fused_forward_call(x_flat, add_mask, params,
                                    num_heads=params["num_heads"], seq_len=S)
    return logits_pad.reshape(B, -1)[:, :params["num_labels"]]


# ----------------------------------- main -------------------------------------

if __name__ == "__main__":
    B, S = 2, 8
    vocab, hidden, ffn, num_labels = 100, 32, 64, 5

    key = jax.random.PRNGKey(0)
    pkey, ikey = jax.random.split(key)
    params = init_params(pkey, vocab=vocab, max_seq=S, hidden=hidden,
                         ffn=ffn, num_layers=2, num_heads=2, num_labels=num_labels)

    input_ids = jax.random.randint(ikey, (B, S), 0, vocab, dtype=jnp.int32)
    attention_mask = jnp.ones((B, S), dtype=jnp.int32).at[1, 6:].set(0)  # pad tail of 2nd seq
    token_type_ids = jnp.zeros((B, S), dtype=jnp.int32)

    logits = multilabel_classifier_forward(params, input_ids, attention_mask,
                                           token_type_ids)
    logits = jax.block_until_ready(logits)
    assert logits.shape == (B, num_labels) and logits.dtype == jnp.float32
    assert bool(jnp.all(jnp.isfinite(logits)))
    print("KERNEL_OK")
</pallas_src>

<mosaic_0001>
module attributes {stable_mosaic.version = 11 : i64} {
  func.func @fused_encoder_kernel(%arg0: i32, %arg1: i32, %arg2: memref<16x32xf32, #tpu.memory_space<any>>, %arg3: memref<1x1x8xf32, #tpu.memory_space<vmem>>, %arg4: memref<1x32xf32, #tpu.memory_space<vmem>>, %arg5: memref<1x32xf32, #tpu.memory_space<vmem>>, %arg6: memref<1x32x96xbf16, #tpu.memory_space<vmem>>, %arg7: memref<1x1x96xf32, #tpu.memory_space<vmem>>, %arg8: memref<1x32x32xbf16, #tpu.memory_space<vmem>>, %arg9: memref<1x32x64xbf16, #tpu.memory_space<vmem>>, %arg10: memref<1x1x64xf32, #tpu.memory_space<vmem>>, %arg11: memref<1x64x32xbf16, #tpu.memory_space<vmem>>, %arg12: memref<1x6x32xf32, #tpu.memory_space<vmem>>, %arg13: memref<32x128xbf16, #tpu.memory_space<vmem>>, %arg14: memref<1x128xf32, #tpu.memory_space<vmem>>, %arg15: memref<1x1x128xf32, #tpu.memory_space<vmem>>, %arg16: memref<8x32xf32, #tpu.memory_space<vmem>>, %arg17: memref<!tpu.dma_semaphore, #tpu.memory_space<semaphore_mem>>) attributes {dimension_semantics = [#tpu.dimension_semantics<parallel>, #tpu.dimension_semantics<arbitrary>], iteration_bounds = array<i64: 2, 2>, scalar_prefetch = 0 : i64, scratch_operands = 2 : i64, tpu.core_type = #tpu.core_type<tc>, window_params = [{}, {transform_indices = @transform_1, window_bounds = array<i64: 1, 1, 8>}, {pipeline_mode = #tpu.pipeline_mode<synchronous>, transform_indices = @transform_2, window_bounds = array<i64: 1, 32>}, {pipeline_mode = #tpu.pipeline_mode<synchronous>, transform_indices = @transform_3, window_bounds = array<i64: 1, 32>}, {transform_indices = @transform_4, window_bounds = array<i64: 1, 32, 96>}, {transform_indices = @transform_5, window_bounds = array<i64: 1, 1, 96>}, {transform_indices = @transform_6, window_bounds = array<i64: 1, 32, 32>}, {transform_indices = @transform_7, window_bounds = array<i64: 1, 32, 64>}, {transform_indices = @transform_8, window_bounds = array<i64: 1, 1, 64>}, {transform_indices = @transform_9, window_bounds = array<i64: 1, 64, 32>}, {transform_indices = @transform_10, window_bounds = array<i64: 1, 6, 32>}, {pipeline_mode = #tpu.pipeline_mode<synchronous>, transform_indices = @transform_11, window_bounds = array<i64: 32, 128>}, {pipeline_mode = #tpu.pipeline_mode<synchronous>, transform_indices = @transform_12, window_bounds = array<i64: 1, 128>}, {transform_indices = @transform_13, window_bounds = array<i64: 1, 1, 128>}]} {
    %c0_i32 = arith.constant 0 : i32
    %0 = arith.cmpi eq, %arg1, %c0_i32 : i32
    %1 = arith.extui %0 : i1 to i32
    %c0_i32_0 = arith.constant 0 : i32
    %2 = arith.cmpi ne, %1, %c0_i32_0 : i32
    scf.if %2 {
      %c8_i32 = arith.constant 8 : i32
      %135 = arith.muli %arg0, %c8_i32 : i32
      %136 = tpu.assume_multiple %135, 8 : i32
      %c0_i32_50 = arith.constant 0 : i32
      %137 = tpu.memref_slice %arg2[%136, %c0_i32_50] : memref<16x32xf32, #tpu.memory_space<any>> -> memref<8x32xf32, #tpu.memory_space<any>>
      tpu.enqueue_dma source(%137 : memref<8x32xf32, #tpu.memory_space<any>>) target(%arg16 : memref<8x32xf32, #tpu.memory_space<vmem>>) target_semaphore(%arg17 : memref<!tpu.dma_semaphore, #tpu.memory_space<semaphore_mem>>)
      %c0_i32_51 = arith.constant 0 : i32
      %138 = tpu.memref_slice %arg2[%136, %c0_i32_51] : memref<16x32xf32, #tpu.memory_space<any>> -> memref<8x32xf32, #tpu.memory_space<any>>
      tpu.wait_dma2 semaphore(%arg17 : memref<!tpu.dma_semaphore, #tpu.memory_space<semaphore_mem>>) src(%138 : memref<8x32xf32, #tpu.memory_space<any>>) dst(%arg16 : memref<8x32xf32, #tpu.memory_space<vmem>>)
      %c0_52 = arith.constant 0 : index
      %c0_53 = arith.constant 0 : index
      %139 = vector.load %arg16[%c0_52, %c0_53] : memref<8x32xf32, #tpu.memory_space<vmem>>, vector<8x32xf32>
      %c0_54 = arith.constant 0 : index
      %c0_55 = arith.constant 0 : index
      %140 = vector.load %arg4[%c0_54, %c0_55] : memref<1x32xf32, #tpu.memory_space<vmem>>, vector<1x32xf32>
      %c0_56 = arith.constant 0 : index
      %c0_57 = arith.constant 0 : index
      %141 = vector.load %arg5[%c0_56, %c0_57] : memref<1x32xf32, #tpu.memory_space<vmem>>, vector<1x32xf32>
      %cst_58 = arith.constant dense<0.000000e+00> : vector<8xf32>
      %142 = vector.multi_reduction <add>, %139, %cst_58 [1] : vector<8x32xf32> to vector<8xf32>
      %143 = vector.shape_cast %142 : vector<8xf32> to vector<8x1xf32>
      %cst_59 = arith.constant 3.200000e+01 : f32
      %144 = vector.broadcast %cst_59 : f32 to vector<8x1xf32>
      %145 = arith.divf %143, %144 : vector<8x1xf32>
      %146 = vector.broadcast %145 : vector<8x1xf32> to vector<8x32xf32>
      %147 = arith.subf %139, %146 : vector<8x32xf32>
      %148 = arith.mulf %147, %147 : vector<8x32xf32>
      %cst_60 = arith.constant dense<0.000000e+00> : vector<8xf32>
      %149 = vector.multi_reduction <add>, %148, %cst_60 [1] : vector<8x32xf32> to vector<8xf32>
      %150 = vector.shape_cast %149 : vector<8xf32> to vector<8x1xf32>
      %cst_61 = arith.constant 3.200000e+01 : f32
      %151 = vector.broadcast %cst_61 : f32 to vector<8x1xf32>
      %152 = arith.divf %150, %151 : vector<8x1xf32>
      %153 = vector.broadcast %145 : vector<8x1xf32> to vector<8x32xf32>
      %154 = arith.subf %139, %153 : vector<8x32xf32>
      %cst_62 = arith.constant 9.99999996E-13 : f32
      %155 = vector.broadcast %cst_62 : f32 to vector<8x1xf32>
      %156 = arith.addf %152, %155 : vector<8x1xf32>
      %157 = math.rsqrt %156 : vector<8x1xf32>
      %158 = vector.broadcast %157 : vector<8x1xf32> to vector<8x32xf32>
      %159 = arith.mulf %154, %158 : vector<8x32xf32>
      %160 = vector.broadcast %140 : vector<1x32xf32> to vector<8x32xf32>
      %161 = arith.mulf %159, %160 : vector<8x32xf32>
      %162 = vector.broadcast %141 : vector<1x32xf32> to vector<8x32xf32>
      %163 = arith.addf %161, %162 : vector<8x32xf32>
      %c0_63 = arith.constant 0 : index
      %c0_64 = arith.constant 0 : index
      %164 = vector.load %arg16[%c0_63, %c0_64] : memref<8x32xf32, #tpu.memory_space<vmem>>, vector<8x32xf32>
      tpu.vector_store %arg16[%c0_63, %c0_64], %163 {strides = array<i32>} : memref<8x32xf32, #tpu.memory_space<vmem>>, vector<8x32xf32>,
    } else {
    }
    %c0 = arith.constant 0 : index
    %c0_1 = arith.constant 0 : index
    %3 = vector.load %arg16[%c0, %c0_1] : memref<8x32xf32, #tpu.memory_space<vmem>>, vector<8x32xf32>
    %4 = arith.truncf %3 : vector<8x32xf32> to vector<8x32xbf16>
    %c0_2 = arith.constant 0 : index
    %c0_3 = arith.constant 0 : index
    %c0_4 = arith.constant 0 : index
    %5 = vector.load %arg12[%c0_2, %c0_3, %c0_4] : memref<1x6x32xf32, #tpu.memory_space<vmem>>, vector<1x6x32xf32>
    %6 = vector.shape_cast %5 : vector<1x6x32xf32> to vector<6x32xf32>
    %7 = vector.extract_strided_slice %6 {offsets = [0, 0], sizes = [1, 32], strides = [1, 1]} : vector<6x32xf32> to vector<1x32xf32>
    %8 = vector.extract_strided_slice %6 {offsets = [1, 0], sizes = [1, 32], strides = [1, 1]} : vector<6x32xf32> to vector<1x32xf32>
    %9 = vector.extract_strided_slice %6 {offsets = [2, 0], sizes = [1, 32], strides = [1, 1]} : vector<6x32xf32> to vector<1x32xf32>
    %10 = vector.extract_strided_slice %6 {offsets = [3, 0], sizes = [1, 32], strides = [1, 1]} : vector<6x32xf32> to vector<1x32xf32>
    %11 = vector.extract_strided_slice %6 {offsets = [4, 0], sizes = [1, 32], strides = [1, 1]} : vector<6x32xf32> to vector<1x32xf32>
    %12 = vector.extract_strided_slice %6 {offsets = [5, 0], sizes = [1, 32], strides = [1, 1]} : vector<6x32xf32> to vector<1x32xf32>
    %c0_5 = arith.constant 0 : index
    %c0_6 = arith.constant 0 : index
    %c0_7 = arith.constant 0 : index
    %13 = vector.load %arg6[%c0_5, %c0_6, %c0_7] : memref<1x32x96xbf16, #tpu.memory_space<vmem>>, vector<1x32x96xbf16>
    %14 = vector.shape_cast %13 : vector<1x32x96xbf16> to vector<32x96xbf16>
    %cst = arith.constant dense<0.000000e+00> : vector<8x96xf32>
    %15 = tpu.matmul %4, %14, %cst {dimension_numbers = #tpu.dot_dimension_numbers<[1], [0], [0], [1], [0, 0, 1, 1], [], []>} : vector<8x32xbf16>, vector<32x96xbf16>, vector<8x96xf32> -> vector<8x96xf32>
    %c0_8 = arith.constant 0 : index
    %c0_9 = arith.constant 0 : index
    %c0_10 = arith.constant 0 : index
    %16 = vector.load %arg7[%c0_8, %c0_9, %c0_10] : memref<1x1x96xf32, #tpu.memory_space<vmem>>, vector<1x1x96xf32>
    %17 = vector.shape_cast %16 : vector<1x1x96xf32> to vector<1x96xf32>
    %18 = vector.broadcast %17 : vector<1x96xf32> to vector<8x96xf32>
    %19 = arith.addf %15, %18 : vector<8x96xf32>
    %20 = vector.extract_strided_slice %19 {offsets = [0, 0], sizes = [8, 32], strides = [1, 1]} : vector<8x96xf32> to vector<8x32xf32>
    %21 = vector.extract_strided_slice %19 {offsets = [0, 32], sizes = [8, 32], strides = [1, 1]} : vector<8x96xf32> to vector<8x32xf32>
    %22 = vector.extract_strided_slice %19 {offsets = [0, 64], sizes = [8, 32], strides = [1, 1]} : vector<8x96xf32> to vector<8x32xf32>
    %23 = vector.shape_cast %20 : vector<8x32xf32> to vector<8x2x16xf32>
    %24 = tpu.transpose %23, [1, 0, 2] : vector<8x2x16xf32> -> vector<2x8x16xf32>
    %25 = arith.truncf %24 : vector<2x8x16xf32> to vector<2x8x16xbf16>
    %26 = vector.shape_cast %21 : vector<8x32xf32> to vector<8x2x16xf32>
    %27 = tpu.transpose %26, [1, 0, 2] : vector<8x2x16xf32> -> vector<2x8x16xf32>
    %28 = arith.truncf %27 : vector<2x8x16xf32> to vector<2x8x16xbf16>
    %29 = vector.shape_cast %22 : vector<8x32xf32> to vector<8x2x16xf32>
    %30 = tpu.transpose %29, [1, 0, 2] : vector<8x2x16xf32> -> vector<2x8x16xf32>
    %31 = arith.truncf %30 : vector<2x8x16xf32> to vector<2x8x16xbf16>
    "tpu.trace_start"() <{level = 10 : i32, message = "hqd,hkd->hqk"}> : () -> ()
    %cst_11 = arith.constant dense<0.000000e+00> : vector<2x8x8xf32>
    %32 = tpu.matmul %25, %28, %cst_11 {dimension_numbers = #tpu.dot_dimension_numbers<[2], [2], [1], [1], [0, 0, 0, 1, 1, 1], [0], [0]>} : vector<2x8x16xbf16>, vector<2x8x16xbf16>, vector<2x8x8xf32> -> vector<2x8x8xf32>
    "tpu.trace_stop"() : () -> ()
    %c0_12 = arith.constant 0 : index
    %c0_13 = arith.constant 0 : index
    %c0_14 = arith.constant 0 : index
    %33 = vector.load %arg3[%c0_12, %c0_13, %c0_14] : memref<1x1x8xf32, #tpu.memory_space<vmem>>, vector<1x1x8xf32>
    %34 = vector.broadcast %33 : vector<1x1x8xf32> to vector<2x8x8xf32>
    %35 = arith.addf %32, %34 : vector<2x8x8xf32>
    %cst_15 = arith.constant dense<0xFF800000> : vector<2x8xf32>
    %36 = vector.multi_reduction <maximumf>, %35, %cst_15 [2] : vector<2x8x8xf32> to vector<2x8xf32>
    %37 = vector.shape_cast %36 : vector<2x8xf32> to vector<2x8x1xf32>
    %38 = vector.broadcast %37 : vector<2x8x1xf32> to vector<2x8x8xf32>
    %39 = arith.subf %35, %38 : vector<2x8x8xf32>
    %40 = math.exp %39 : vector<2x8x8xf32>
    %cst_16 = arith.constant dense<0.000000e+00> : vector<2x8xf32>
    %41 = vector.multi_reduction <add>, %40, %cst_16 [2] : vector<2x8x8xf32> to vector<2x8xf32>
    %42 = vector.shape_cast %41 : vector<2x8xf32> to vector<2x8x1xf32>
    %43 = tpu.reciprocal %42 {approx = true} : vector<2x8x1xf32> -> vector<2x8x1xf32>
    %44 = vector.broadcast %43 : vector<2x8x1xf32> to vector<2x8x8xf32>
    %45 = arith.mulf %40, %44 : vector<2x8x8xf32>
    %46 = arith.truncf %45 : vector<2x8x8xf32> to vector<2x8x8xbf16>
    "tpu.trace_start"() <{level = 10 : i32, message = "hqk,hkd->hqd"}> : () -> ()
    %cst_17 = arith.constant dense<0.000000e+00> : vector<2x8x16xf32>
    %47 = tpu.matmul %46, %31, %cst_17 {dimension_numbers = #tpu.dot_dimension_numbers<[2], [1], [1], [2], [0, 0, 0, 1, 1, 2], [0], [0]>} : vector<2x8x8xbf16>, vector<2x8x16xbf16>, vector<2x8x16xf32> -> vector<2x8x16xf32>
    "tpu.trace_stop"() : () -> ()
    %48 = tpu.transpose %47, [1, 0, 2] : vector<2x8x16xf32> -> vector<8x2x16xf32>
    %49 = vector.shape_cast %48 : vector<8x2x16xf32> to vector<8x32xf32>
    %50 = arith.truncf %49 : vector<8x32xf32> to vector<8x32xbf16>
    %c0_18 = arith.constant 0 : index
    %c0_19 = arith.constant 0 : index
    %c0_20 = arith.constant 0 : index
    %51 = vector.load %arg8[%c0_18, %c0_19, %c0_20] : memref<1x32x32xbf16, #tpu.memory_space<vmem>>, vector<1x32x32xbf16>
    %52 = vector.shape_cast %51 : vector<1x32x32xbf16> to vector<32x32xbf16>
    %cst_21 = arith.constant dense<0.000000e+00> : vector<8x32xf32>
    %53 = tpu.matmul %50, %52, %cst_21 {dimension_numbers = #tpu.dot_dimension_numbers<[1], [0], [0], [1], [0, 0, 1, 1], [], []>} : vector<8x32xbf16>, vector<32x32xbf16>, vector<8x32xf32> -> vector<8x32xf32>
    %54 = vector.broadcast %7 : vector<1x32xf32> to vector<8x32xf32>
    %55 = arith.addf %53, %54 : vector<8x32xf32>
    %56 = arith.addf %3, %55 : vector<8x32xf32>
    %cst_22 = arith.constant dense<0.000000e+00> : vector<8xf32>
    %57 = vector.multi_reduction <add>, %56, %cst_22 [1] : vector<8x32xf32> to vector<8xf32>
    %58 = vector.shape_cast %57 : vector<8xf32> to vector<8x1xf32>
    %cst_23 = arith.constant 3.200000e+01 : f32
    %59 = vector.broadcast %cst_23 : f32 to vector<8x1xf32>
    %60 = arith.divf %58, %59 : vector<8x1xf32>
    %61 = vector.broadcast %60 : vector<8x1xf32> to vector<8x32xf32>
    %62 = arith.subf %56, %61 : vector<8x32xf32>
    %63 = arith.mulf %62, %62 : vector<8x32xf32>
    %cst_24 = arith.constant dense<0.000000e+00> : vector<8xf32>
    %64 = vector.multi_reduction <add>, %63, %cst_24 [1] : vector<8x32xf32> to vector<8xf32>
    %65 = vector.shape_cast %64 : vector<8xf32> to vector<8x1xf32>
    %cst_25 = arith.constant 3.200000e+01 : f32
    %66 = vector.broadcast %cst_25 : f32 to vector<8x1xf32>
    %67 = arith.divf %65, %66 : vector<8x1xf32>
    %68 = vector.broadcast %60 : vector<8x1xf32> to vector<8x32xf32>
    %69 = arith.subf %56, %68 : vector<8x32xf32>
    %cst_26 = arith.constant 9.99999996E-13 : f32
    %70 = vector.broadcast %cst_26 : f32 to vector<8x1xf32>
    %71 = arith.addf %67, %70 : vector<8x1xf32>
    %72 = math.rsqrt %71 : vector<8x1xf32>
    %73 = vector.broadcast %72 : vector<8x1xf32> to vector<8x32xf32>
    %74 = arith.mulf %69, %73 : vector<8x32xf32>
    %75 = vector.broadcast %9 : vector<1x32xf32> to vector<8x32xf32>
    %76 = arith.mulf %74, %75 : vector<8x32xf32>
    %77 = vector.broadcast %10 : vector<1x32xf32> to vector<8x32xf32>
    %78 = arith.addf %76, %77 : vector<8x32xf32>
    %79 = arith.truncf %78 : vector<8x32xf32> to vector<8x32xbf16>
    %c0_27 = arith.constant 0 : index
    %c0_28 = arith.constant 0 : index
    %c0_29 = arith.constant 0 : index
    %80 = vector.load %arg9[%c0_27, %c0_28, %c0_29] : memref<1x32x64xbf16, #tpu.memory_space<vmem>>, vector<1x32x64xbf16>
    %81 = vector.shape_cast %80 : vector<1x32x64xbf16> to vector<32x64xbf16>
    %cst_30 = arith.constant dense<0.000000e+00> : vector<8x64xf32>
    %82 = tpu.matmul %79, %81, %cst_30 {dimension_numbers = #tpu.dot_dimension_numbers<[1], [0], [0], [1], [0, 0, 1, 1], [], []>} : vector<8x32xbf16>, vector<32x64xbf16>, vector<8x64xf32> -> vector<8x64xf32>
    %c0_31 = arith.constant 0 : index
    %c0_32 = arith.constant 0 : index
    %c0_33 = arith.constant 0 : index
    %83 = vector.load %arg10[%c0_31, %c0_32, %c0_33] : memref<1x1x64xf32, #tpu.memory_space<vmem>>, vector<1x1x64xf32>
    %84 = vector.shape_cast %83 : vector<1x1x64xf32> to vector<1x64xf32>
    %85 = vector.broadcast %84 : vector<1x64xf32> to vector<8x64xf32>
    %86 = arith.addf %82, %85 : vector<8x64xf32>
    %87 = arith.mulf %86, %86 : vector<8x64xf32>
    %88 = arith.mulf %86, %87 : vector<8x64xf32>
    %cst_34 = arith.constant 4.471500e-02 : f32
    %89 = vector.broadcast %cst_34 : f32 to vector<8x64xf32>
    %90 = arith.mulf %89, %88 : vector<8x64xf32>
    %91 = arith.addf %86, %90 : vector<8x64xf32>
    %cst_35 = arith.constant 0.797884583 : f32
    %92 = vector.broadcast %cst_35 : f32 to vector<8x64xf32>
    %93 = arith.mulf %92, %91 : vector<8x64xf32>
    %94 = math.tanh %93 : vector<8x64xf32>
    %cst_36 = arith.constant 1.000000e+00 : f32
    %95 = vector.broadcast %cst_36 : f32 to vector<8x64xf32>
    %96 = arith.addf %95, %94 : vector<8x64xf32>
    %cst_37 = arith.constant 5.000000e-01 : f32
    %97 = vector.broadcast %cst_37 : f32 to vector<8x64xf32>
    %98 = arith.mulf %97, %96 : vector<8x64xf32>
    %99 = arith.mulf %86, %98 : vector<8x64xf32>
    %100 = arith.truncf %99 : vector<8x64xf32> to vector<8x64xbf16>
    %c0_38 = arith.constant 0 : index
    %c0_39 = arith.constant 0 : index
    %c0_40 = arith.constant 0 : index
    %101 = vector.load %arg11[%c0_38, %c0_39, %c0_40] : memref<1x64x32xbf16, #tpu.memory_space<vmem>>, vector<1x64x32xbf16>
    %102 = vector.shape_cast %101 : vector<1x64x32xbf16> to vector<64x32xbf16>
    %cst_41 = arith.constant dense<0.000000e+00> : vector<8x32xf32>
    %103 = tpu.matmul %100, %102, %cst_41 {dimension_numbers = #tpu.dot_dimension_numbers<[1], [0], [0], [1], [0, 0, 1, 1], [], []>} : vector<8x64xbf16>, vector<64x32xbf16>, vector<8x32xf32> -> vector<8x32xf32>
    %104 = vector.broadcast %8 : vector<1x32xf32> to vector<8x32xf32>
    %105 = arith.addf %103, %104 : vector<8x32xf32>
    %106 = arith.addf %78, %105 : vector<8x32xf32>
    %cst_42 = arith.constant dense<0.000000e+00> : vector<8xf32>
    %107 = vector.multi_reduction <add>, %106, %cst_42 [1] : vector<8x32xf32> to vector<8xf32>
    %108 = vector.shape_cast %107 : vector<8xf32> to vector<8x1xf32>
    %cst_43 = arith.constant 3.200000e+01 : f32
    %109 = vector.broadcast %cst_43 : f32 to vector<8x1xf32>
    %110 = arith.divf %108, %109 : vector<8x1xf32>
    %111 = vector.broadcast %110 : vector<8x1xf32> to vector<8x32xf32>
    %112 = arith.subf %106, %111 : vector<8x32xf32>
    %113 = arith.mulf %112, %112 : vector<8x32xf32>
    %cst_44 = arith.constant dense<0.000000e+00> : vector<8xf32>
    %114 = vector.multi_reduction <add>, %113, %cst_44 [1] : vector<8x32xf32> to vector<8xf32>
    %115 = vector.shape_cast %114 : vector<8xf32> to vector<8x1xf32>
    %cst_45 = arith.constant 3.200000e+01 : f32
    %116 = vector.broadcast %cst_45 : f32 to vector<8x1xf32>
    %117 = arith.divf %115, %116 : vector<8x1xf32>
    %118 = vector.broadcast %110 : vector<8x1xf32> to vector<8x32xf32>
    %119 = arith.subf %106, %118 : vector<8x32xf32>
    %cst_46 = arith.constant 9.99999996E-13 : f32
    %120 = vector.broadcast %cst_46 : f32 to vector<8x1xf32>
    %121 = arith.addf %117, %120 : vector<8x1xf32>
    %122 = math.rsqrt %121 : vector<8x1xf32>
    %123 = vector.broadcast %122 : vector<8x1xf32> to vector<8x32xf32>
    %124 = arith.mulf %119, %123 : vector<8x32xf32>
    %125 = vector.broadcast %11 : vector<1x32xf32> to vector<8x32xf32>
    %126 = arith.mulf %124, %125 : vector<8x32xf32>
    %127 = vector.broadcast %12 : vector<1x32xf32> to vector<8x32xf32>
    %128 = arith.addf %126, %127 : vector<8x32xf32>
    %c1_i32 = arith.constant 1 : i32
    %129 = arith.cmpi slt, %arg1, %c1_i32 : i32
    %130 = arith.extui %129 : i1 to i32
    %c0_i32_47 = arith.constant 0 : i32
    %131 = arith.cmpi ne, %130, %c0_i32_47 : i32
    scf.if %131 {
      %c0_50 = arith.constant 0 : index
      %c0_51 = arith.constant 0 : index
      %135 = vector.load %arg16[%c0_50, %c0_51] : memref<8x32xf32, #tpu.memory_space<vmem>>, vector<8x32xf32>
      tpu.vector_store %arg16[%c0_50, %c0_51], %128 {strides = array<i32>} : memref<8x32xf32, #tpu.memory_space<vmem>>, vector<8x32xf32>,
    } else {
    }
    %c1_i32_48 = arith.constant 1 : i32
    %132 = arith.cmpi eq, %arg1, %c1_i32_48 : i32
    %133 = arith.extui %132 : i1 to i32
    %c0_i32_49 = arith.constant 0 : i32
    %134 = arith.cmpi ne, %133, %c0_i32_49 : i32
    scf.if %134 {
      %135 = vector.shape_cast %128 : vector<8x32xf32> to vector<1x8x32xf32>
      %136 = vector.extract_strided_slice %135 {offsets = [0, 0, 0], sizes = [1, 1, 32], strides = [1, 1, 1]} : vector<1x8x32xf32> to vector<1x1x32xf32>
      %137 = vector.shape_cast %136 : vector<1x1x32xf32> to vector<1x32xf32>
      %138 = arith.truncf %137 : vector<1x32xf32> to vector<1x32xbf16>
      %c0_50 = arith.constant 0 : index
      %c0_51 = arith.constant 0 : index
      %139 = vector.load %arg13[%c0_50, %c0_51] : memref<32x128xbf16, #tpu.memory_space<vmem>>, vector<32x128xbf16>
      %cst_52 = arith.constant dense<0.000000e+00> : vector<1x128xf32>
      %140 = tpu.matmul %138, %139, %cst_52 {dimension_numbers = #tpu.dot_dimension_numbers<[1], [0], [0], [1], [0, 0, 1, 1], [], []>} : vector<1x32xbf16>, vector<32x128xbf16>, vector<1x128xf32> -> vector<1x128xf32>
      %c0_53 = arith.constant 0 : index
      %c0_54 = arith.constant 0 : index
      %141 = vector.load %arg14[%c0_53, %c0_54] : memref<1x128xf32, #tpu.memory_space<vmem>>, vector<1x128xf32>
      %142 = arith.addf %140, %141 : vector<1x128xf32>
      %143 = vector.shape_cast %142 : vector<1x128xf32> to vector<1x1x128xf32>
      %c0_55 = arith.constant 0 : index
      %c0_56 = arith.constant 0 : index
      %c0_57 = arith.constant 0 : index
      %144 = vector.load %arg15[%c0_55, %c0_56, %c0_57] : memref<1x1x128xf32, #tpu.memory_space<vmem>>, vector<1x1x128xf32>
      tpu.vector_store %arg15[%c0_55, %c0_56, %c0_57], %143 {strides = array<i32>} : memref<1x1x128xf32, #tpu.memory_space<vmem>>, vector<1x1x128xf32>,
    } else {
    }
    return
  }
  func.func @transform_1(%arg0: i32, %arg1: i32) -> (i32, i32, i32) {
    %c0_i32 = arith.constant 0 : i32
    %c0_i32_0 = arith.constant 0 : i32
    %c0_i32_1 = arith.constant 0 : i32
    return %arg0, %c0_i32, %c0_i32_0 : i32, i32, i32
  }
  func.func @transform_2(%arg0: i32, %arg1: i32) -> (i32, i32) {
    %c0_i32 = arith.constant 0 : i32
    %c0_i32_0 = arith.constant 0 : i32
    %c0_i32_1 = arith.constant 0 : i32
    return %c0_i32, %c0_i32_0 : i32, i32
  }
  func.func @transform_3(%arg0: i32, %arg1: i32) -> (i32, i32) {
    %c0_i32 = arith.constant 0 : i32
    %c0_i32_0 = arith.constant 0 : i32
    %c0_i32_1 = arith.constant 0 : i32
    return %c0_i32, %c0_i32_0 : i32, i32
  }
  func.func @transform_4(%arg0: i32, %arg1: i32) -> (i32, i32, i32) {
    %c0_i32 = arith.constant 0 : i32
    %c0_i32_0 = arith.constant 0 : i32
    %c0_i32_1 = arith.constant 0 : i32
    return %arg1, %c0_i32, %c0_i32_0 : i32, i32, i32
  }
  func.func @transform_5(%arg0: i32, %arg1: i32) -> (i32, i32, i32) {
    %c0_i32 = arith.constant 0 : i32
    %c0_i32_0 = arith.constant 0 : i32
    %c0_i32_1 = arith.constant 0 : i32
    return %arg1, %c0_i32, %c0_i32_0 : i32, i32, i32
  }
  func.func @transform_6(%arg0: i32, %arg1: i32) -> (i32, i32, i32) {
    %c0_i32 = arith.constant 0 : i32
    %c0_i32_0 = arith.constant 0 : i32
    %c0_i32_1 = arith.constant 0 : i32
    return %arg1, %c0_i32, %c0_i32_0 : i32, i32, i32
  }
  func.func @transform_7(%arg0: i32, %arg1: i32) -> (i32, i32, i32) {
    %c0_i32 = arith.constant 0 : i32
    %c0_i32_0 = arith.constant 0 : i32
    %c0_i32_1 = arith.constant 0 : i32
    return %arg1, %c0_i32, %c0_i32_0 : i32, i32, i32
  }
  func.func @transform_8(%arg0: i32, %arg1: i32) -> (i32, i32, i32) {
    %c0_i32 = arith.constant 0 : i32
    %c0_i32_0 = arith.constant 0 : i32
    %c0_i32_1 = arith.constant 0 : i32
    return %arg1, %c0_i32, %c0_i32_0 : i32, i32, i32
  }
  func.func @transform_9(%arg0: i32, %arg1: i32) -> (i32, i32, i32) {
    %c0_i32 = arith.constant 0 : i32
    %c0_i32_0 = arith.constant 0 : i32
    %c0_i32_1 = arith.constant 0 : i32
    return %arg1, %c0_i32, %c0_i32_0 : i32, i32, i32
  }
  func.func @transform_10(%arg0: i32, %arg1: i32) -> (i32, i32, i32) {
    %c0_i32 = arith.constant 0 : i32
    %c0_i32_0 = arith.constant 0 : i32
    %c0_i32_1 = arith.constant 0 : i32
    return %arg1, %c0_i32, %c0_i32_0 : i32, i32, i32
  }
  func.func @transform_11(%arg0: i32, %arg1: i32) -> (i32, i32) {
    %c0_i32 = arith.constant 0 : i32
    %c0_i32_0 = arith.constant 0 : i32
    %c0_i32_1 = arith.constant 0 : i32
    return %c0_i32, %c0_i32_0 : i32, i32
  }
  func.func @transform_12(%arg0: i32, %arg1: i32) -> (i32, i32) {
    %c0_i32 = arith.constant 0 : i32
    %c0_i32_0 = arith.constant 0 : i32
    %c0_i32_1 = arith.constant 0 : i32
    return %c0_i32, %c0_i32_0 : i32, i32
  }
  func.func @transform_13(%arg0: i32, %arg1: i32) -> (i32, i32, i32) {
    %c0_i32 = arith.constant 0 : i32
    %c0_i32_0 = arith.constant 0 : i32
    %c0_i32_1 = arith.constant 0 : i32
    return %arg0, %c0_i32, %c0_i32_0 : i32, i32, i32
  }
}

</mosaic_0001>

<bundles_post_ra>
// kernel: tpu_custom_call.1
= control target key start
LH: loop header
LB: loop body
LE: loop exit
PB: predicated region body
PF: predicated region fallthrough
CT: control target
= control target key end

     0   :  { %s2780_s0 = inlined_call_operand.hbm [shape: f32[16,32], index: 0, kind: input, shape index: {}]   ;;  %s2781_s1 = inlined_call_operand.vmem [shape: f32[2,1,8], index: 1, kind: input, shape index: {}]   ;;  %s2782_s2 = inlined_call_operand.hbm [shape: f32[1,32], index: 2, kind: input, shape index: {}]   ;;  %s2783_s3 = inlined_call_operand.hbm [shape: f32[1,32], index: 3, kind: input, shape index: {}]   ;;  %s2784_s4 = inlined_call_operand.vmem [shape: bf16[2,32,96], index: 4, kind: input, shape index: {}]   ;;  %s2785_s5 = inlined_call_operand.vmem [shape: f32[2,1,96], index: 5, kind: input, shape index: {}]   ;;  %s2786_s6 = inlined_call_operand.vmem [shape: bf16[2,32,32], index: 6, kind: input, shape index: {}]   ;;  %s2787_s7 = inlined_call_operand.vmem [shape: bf16[2,32,64], index: 7, kind: input, shape index: {}]   ;;  %s2788_s8 = inlined_call_operand.hbm [shape: f32[2,1,64], index: 8, kind: input, shape index: {}]   ;;  %s2789_s9 = inlined_call_operand.vmem [shape: bf16[2,64,32], index: 9, kind: input, shape index: {}]   ;;  %s2790_s10 = inlined_call_operand.vmem [shape: f32[2,6,32], index: 10, kind: input, shape index: {}]   ;;  %s2791_s11 = inlined_call_operand.hbm [shape: bf16[32,128], index: 11, kind: input, shape index: {}]   ;;  %s2792_s12 = inlined_call_operand.vmem [shape: f32[1,128], index: 12, kind: input, shape index: {}]   ;;  %s2793_s13 = inlined_call_operand.hbm [shape: f32[2,1,128], index: 13, kind: output, shape index: {}]  }
   0x1   :  { %2806 = sst [smem:[#allocation33_spill]] %s2780_s0 }
   0x2   :  { %2807 = sst [smem:[#allocation34_spill]] %s2782_s2 }
   0x3   :  { %2808 = sst [smem:[#allocation35_spill]] %s2783_s3 }
   0x4   :  { %2809 = sst [smem:[#allocation36_spill]] %s2784_s4 }
   0x5   :  { %2810 = sst [smem:[#allocation37_spill]] %s2786_s6 }
   0x6   :  { %2811 = sst [smem:[#allocation38_spill]] %s2787_s7 }
   0x7   :  { %2812 = sst [smem:[#allocation39_spill]] %s2788_s8 }
   0x8   :  { %2813 = sst [smem:[#allocation40_spill]] %s2789_s9 }
   0x9   :  { %2814 = sst [smem:[#allocation41_spill]] %s2790_s10 }
   0xa   :  { %2815 = sst [smem:[#allocation42_spill]] %s2791_s11 }
   0xb   :  { %2816 = sst [smem:[#allocation43_spill]] %s2792_s12 }
   0xc   :  { %2817 = sst [smem:[#allocation44_spill]] %s2793_s13 }
   0xd   :  { %18 = vsyncpa [#allocation5], 0 }
   0xe   :  { %19 = vsyncpa [#allocation8], 0 }
   0xf   :  { %20 = vsyncpa [#allocation6], 0 }
  0x10   :  { %22 = vsyncpa [#allocation6 + $0x1], 0  ;;  %s2288_s25 = smov 0   ;;  %s2290_s26 = smov 0  }
  0x11   :  { %s2292_s27 = smov 0   ;;  %s2294_s28 = smov 0  }
  0x12   :  { %s2296_s29 = smov 0   ;;  %s2298_s30 = smov 0  }
  0x13   :  { %s2300_s14 = smov 0   ;;  %s2302_s15 = smov 0  }
  0x14   :  { %s2304_s16 = smov 0   ;;  %s2306_s17 = smov 0  }
  0x15   :  { %s2308_s18 = smov 0  }
  0x16 LB: > { %2818 = sst [smem:[#allocation22_spill]] %s2162_s25  ;;  %s2342_s19 = sadd.s32 4294967295, %s2202_s18   ;;  %s2202_s18 = sphi %s2308_s18, %s28_s18   ;;  %s2198_s17 = sphi %s2306_s17, %s2863_s17   ;;  %s2194_s16 = sphi %s2304_s16, %s2862_s16   ;;  %s2190_s15 = sphi %s2302_s15, %s2861_s15   ;;  %s2186_s14 = sphi %s2300_s14, %s2860_s14   ;;  %s2182_s30 = sphi %s2298_s30, %s2859_s30   ;;  %s2178_s29 = sphi %s2296_s29, %s2858_s29   ;;  %s2174_s28 = sphi %s2294_s28, %s2857_s28   ;;  %s2170_s27 = sphi %s2292_s27, %s2866_s27   ;;  %s2166_s26 = sphi %s2290_s26, %s2865_s26   ;;  %s2162_s25 = sphi %s2288_s25, %s2864_s25  }
  0x17   : > { %2819 = sst [smem:[#allocation23_spill]] %s2178_s29  ;;  %s1644_s20 = sadd.s32 4294967294, %s2202_s18  }
  0x18   : > { %2820 = sst [smem:[#allocation24_spill]] %s2182_s30  ;;  %p232_p0 = scmp.ne.s32.totalorder %s2178_s29, %s2174_s28 }
  0x19   : > { %2821 = sst [smem:[#allocation25_spill]] %s2194_s16  ;;  %p233_p1 = scmp.eq.s32.totalorder %s2342_s19, 0 }
  0x1a   : > { %2822 = sst [smem:[#allocation26_spill]] %s2198_s17  ;;  %p349_p2 = scmp.ne.s32.totalorder %s2170_s27, %s2166_s26 }
  0x1b   : > { %p2352_p3 = por %p233_p1, %p232_p0  ;;  %p350_p4 = scmp.eq.s32.totalorder %s2342_s19, 3 }
  0x1c   : > { %p355_p5 = scmp.ne.s32.totalorder %s2166_s26, %s2162_s25  ;;  %p356_p6 = scmp.eq.s32.totalorder %s1644_s20, 3 }
  0x1d   : > { %p2359_p7 = por %p350_p4, %p349_p2  ;;  %p1645_p8 = scmp.ge.s32.totalorder %s2202_s18, 1 }
  0x1e   : > { %p2364_p9 = por %p356_p6, %p355_p5  ;;  %p363_p10 = scmp.lt.s32.totalorder %s2202_s18, 5 }
  0x1f   : > { %s2824_s23 = scalar_select %p2359_p7, 1, 0 }
  0x20   : > { %s2826_s24 = scalar_select %p2364_p9, 1, 0 }
  0x21   : > { %2825 = sst [smem:[#allocation27_spill]] %s2824_s23  ;;  %p2372_p11 = pnand %p1645_p8, %p363_p10 }
  0x22   : > { %2827 = sst [smem:[#allocation28_spill]] %s2826_s24  ;;  %s2204_s20 = smov [#allocation4]  }
  0x23   : > { %s2828_s2 = sld [smem:[#allocation34_spill]]  ;;  %p1759_p12 = pneg %p2372_p11 }
  0x24   : > { %s377_s25 = sshll.u32 %s2204_s20, 4  ;;  %s2830_s3 = sld [smem:[#allocation35_spill]]  ;;  %s378_s25 = int_to_ptr.vmem [resolvable:$true] %s377_s25 }
  0x25   : > { %p2383_p13 = pnand %p1759_p12, %p233_p1  ;;  %s2832_s11 = sld [smem:[#allocation42_spill]] }
  0x26   : > { %s2205_s10 = smov [#allocation7]   ;;  %s2206_s23 = smov [#allocation10]  }
  0x27   : > { %s389_s0 = sshll.u32 %s2205_s10, 4  ;;  %s2208_s28 = smov 4   ;;  %s390_s0 = int_to_ptr.vmem [resolvable:$true] %s389_s0 }
  0x28   : > { %s37_s10 = sadd.s32 1, %s2194_s16  ;;  %p226_p2 = scmp.ne.s32.totalorder %s2182_s30, %s2178_s29 }
  0x29   : > { %s375_s13 = sshll.u32 %s2828_s2, 4  ;;  %s2207_s2 = smov 64   ;;  %s376_s13 = int_to_ptr.hbm [resolvable:$true] %s375_s13 }
  0x2a   : > { %s387_s24 = sshll.u32 %s2830_s3, 4  ;;  %s400_s3 = sshll.u32 %s2206_s23, 4  ;;  %s388_s24 = int_to_ptr.hbm [resolvable:$true] %s387_s24  ;;  %s401_s3 = int_to_ptr.vmem [resolvable:$true] %s400_s3 }
  0x2b   : > { %s398_s20 = sshll.u32 %s2832_s11, 4  ;;  %p38_p0 = scmp.ge.s32.totalorder %s37_s10, 2  ;;  %s399_s20 = int_to_ptr.hbm [resolvable:$true] %s398_s20 }
  0x2c   : > { %1762 = dma.hbm_to_vmem [thread:$0]  (!%p2383_p13), %s376_s13, 16, %s378_s25, [#allocation5]  }
  0x2d   : > { %1765 = dma.hbm_to_vmem [thread:$0]  (!%p2383_p13), %s388_s24, 16, %s390_s0, [#allocation8]  }
  0x2e   : > { %1768 = dma.hbm_to_vmem [thread:$0]  (!%p2383_p13), %s399_s20, 256, %s401_s3, [#allocation8], %s2207_s2, %s2207_s2, %s2208_s28  }
  0x2f   : > { %s40_s13 = sadd.s32 1, %s2198_s17  ;;  %s219_s25 = sadd.s32 1, %s2182_s30 }
  0x30   : > { %s2868_s10 = smov (%p38_p0, %s37_s10), 0  ;;  %s2870_s13 = smov (!%p38_p0, %s40_s13), %s2198_s17 }
  0x31   : > { %2833 = sst [smem:[#allocation29_spill]] %s2868_s10  ;;  %s216_s24 = ssub.s32 %s2194_s16, %s2868_s10 }
  0x32   : > { %p227_p4 = scmp.eq.s32.totalorder %s2202_s18, 0  ;;  %p42_p5 = scmp.ge.s32.totalorder %s2870_s13, 2 }
  0x33   : > { %p217_p6 = scmp.eq.s32.totalorder %s216_s24, 0  ;;  %p1780_p10 = scmp.lt.s32.totalorder %s2202_s18, 4 }
  0x34   : > { %p2407_p8 = por %p227_p4, %p226_p2  ;;  %s2872_s13 = smov (%p42_p5, %s2870_s13), 0 }
  0x35   : > { %2835 = sst [smem:[#allocation30_spill]] %s2872_s13  ;;  %s336_s20 = ssub.s32 %s2198_s17, %s2872_s13 }
  0x36   : > { %s2415_s21 = scalar_select %p217_p6, %s2182_s30, %s219_s25  }
  0x37   : > { %s453_s0 = sand.u32 1, %s2202_s18   ;;  %p337_p12 = scmp.eq.s32.totalorder %s336_s20, 0 }
  0x38   : > { %2836 = sst [smem:[#allocation31_spill]] %s2415_s21  ;;  %s455_s23 = sand.u32 1, %s2182_s30  }
  0x39   : > { %s2837_s8 = sld [smem:[#allocation39_spill]]  ;;  %s2838_s11 = sadd.s32 1, %s2170_s27 }
  0x3a   : > { %s2428_s10 = scalar_select %p337_p12, %s2170_s27, %s2838_s11  }
  0x3b   : > { %s456_s7 = scalar_lea.vmem [#allocation9], %s455_s23  ;;  %p1770_p13 = pnand %p1780_p10, %p2407_p8 }
  0x3c   : > { %2839 = sst [smem:[#allocation32_spill]] %s2428_s10  ;;  %s463_s6 = sshll.u32 %s456_s7, 4  ;;  %s464_s6 = int_to_ptr.vmem [resolvable:$true] %s463_s6 }
  0x3d   : > { %s454_s25 = scalar_lea.sflag [#allocation5], %s453_s0  ;;  %487 = sbr.rel (%p2372_p11) target bundleno = 2578 (0xa12), region = 68 }
  0x3f   : > { %s459_s24 = scalar_lea.hbm %s2837_s8, %s2194_s16 }
  0x40   : > { %s461_s9 = sshll.u32 %s459_s24, 4  ;;  %s462_s9 = int_to_ptr.hbm [resolvable:$true] %s461_s9 }
  0x41   : > { %1772 = dma.hbm_to_vmem [thread:$0]  (!%p1770_p13), %s462_s9, 16, %s464_s6, %s454_s25  }
  0x42   : > { %2139 = dma.done.wait (%p233_p1), [#allocation5], 16  }
  0x43   : > { %2141 = vsyncadd (%p233_p1), [#allocation5], 4294967280 }
  0x44   : > { %2143 = dma.done.wait (%p233_p1), [#allocation8], 16  }
  0x45   : > { %2145 = vsyncadd (%p233_p1), [#allocation8], 4294967280  ;;  %s499_s7 = sand.u32 1, %s2342_s19   ;;  %s501_s6 = sand.u32 1, %s2178_s29  }
  0x46   : > { %s500_s9 = scalar_lea.sflag [#allocation5], %s499_s7  ;;  %s2446_s11 = scalar_lea.vmem [#allocation9], %s501_s6 }
  0x47   : > { %2147 = dma.done.wait (%p2352_p3), %s500_s9, 16  }
  0x48   : > { %2149 = vsyncadd (%p2352_p3), %s500_s9, 4294967280 }
  0x49   : > { %2151 = dma.done.wait (%p233_p1), [#allocation8], 256  }
  0x4a   : > { %2153 = vsyncadd (%p233_p1), [#allocation8], 4294967040  ;;  %p577_p11 = scmp.lt.s32.totalorder %s2190_s15, 1  ;;  %p580_p0 = scmp.lt.s32.totalorder %s2186_s14, 1 }
  0x4b   : > { %s2840_s4 = sld [smem:[#allocation36_spill]]  ;;  %s2845_s12 = sand.u32 1, %s2166_s26  }
  0x4c   : > { %s2460_s3 = scalar_select %p577_p11, %s2190_s15, 1 }
  0x4d   : > { %s2463_s22 = scalar_select %p580_p0, %s2186_s14, 1 }
  0x4e   : > { %s2841_s8 = sld [smem:[#allocation37_spill]]  ;;  %p1663_p1 = scmp.ne.s32.totalorder %s2186_s14, 0 }
  0x4f   : > { %s1727_s23 = sshll.u32 %s2463_s22, 4  ;;  %s2842_s17 = sld [smem:[#allocation38_spill]] }
  0x50   : > { %s1730_s19 = sshll.u32 %s2463_s22, 5  ;;  %s2843_s2 = sld [smem:[#allocation40_spill]] }
  0x51   : > { %s2477_s6 = scalar_lea.vmem %s2840_s4, %s1727_s23  ;;  %s1662_s24 = sshll.u32 %s2463_s22, 3 }
  0x52   : > { %s2844_s4 = sld [smem:[#allocation41_spill]]  ;;  %s2209_s21 = smov (!%p1663_p1), [#allocation2]  }
  0x53   : > { %s2846_s20 = sld [smem:[#allocation33_spill]] (!%p1663_p1) }
  0x54   : > { %s2482_s13 = scalar_lea.vmem %s2841_s8, %s1727_s23  ;;  %s2503_s8 = scalar_lea.vmem [#allocation11], %s2845_s12 }
  0x55   : > { %s2487_s16 = scalar_lea.vmem %s2842_s17, %s1727_s23  ;;  %611 = sbr.rel (%p1663_p1) target bundleno = 372 (0x174), region = 88 }
  0x56   : > { %s2493_s28 = scalar_lea.vmem %s2843_s2, %s1730_s19  ;;  %s1664_s17 = sshll.u32 (!%p1663_p1), %s2190_s15, 3 }
  0x57   : > { %s623_s19 = sshll.u32 (!%p1663_p1), %s2209_s21, 4  ;;  %s624_s19 = int_to_ptr.vmem [resolvable:$true] %s623_s19 }
  0x58   : > { %s2499_s29 = scalar_lea.vmem %s2844_s4, %s1662_s24 }
  0x59   : > { %s613_s30 = scalar_lea.hbm (!%p1663_p1), %s2846_s20, %s1664_s17  ;;  %s2046_s7 = scalar_lea.hbm (!%p1663_p1), %s2846_s20, 16 }
  0x5a   : > { %s621_s0 = sshll.u32 %s613_s30, 4  ;;  %s622_s0 = int_to_ptr.hbm [resolvable:$true] %s621_s0 }
  0x5b   : > { %s2042_s2 = sshra.s32 %s622_s0, 4  ;;  %s2043_s2 = int_to_ptr.hbm [resolvable:$true] %s2042_s2 }
  0x5c   : > { %s2044_s4 = scalar_lea.hbm %s2043_s2, 8  ;;  %p2047_p2 = scmp.lt.s32.totalorder %s2043_s2, %s2846_s20 }
  0x5d   : > { %p2045_p3 = scmp.ne.s32.totalorder %s2043_s2, %s2044_s4  ;;  %p2048_p4 = scmp.lt.s32.totalorder %s2046_s7, %s2044_s4 }
  0x5f   : > { %p2049_p5 = por %p2048_p4, %p2047_p2 }
  0x61   : > { %p2050_p6 = pnand %p2049_p5, %p2045_p3 }
  0x63   : > { %2053 = shalt.err (!%p2050_p6)  }
  0x64   : > { %626 = dma.hbm_to_vmem [thread:$0]  %s622_s0, 128, %s624_s19, [#allocation3] }
  0x65   : > { %2154 = dma.done.wait [#allocation3], 128 }
  0x66   : > { %2155 = vsyncadd [#allocation3], 4294967168  ;;  %vm633_vm0 = vcmask 261120   ;;  %v630_v0 = vld [vmem:[#allocation2] sm:$0xff]  ;;  %v2210_v2 = vmov 32.0  }
  0x67   : > { %v634_v1 = vsel %vm633_vm0, %v630_v0, 0.0  ;;  %1889 = vrcp.f32 %v2210_v2  ;;  %v1887_v23 = vld [vmem:[#allocation4] ss:$0 sm:$0xff]  ;;  %v1888_v25 = vld [vmem:[#allocation7] ss:$0 sm:$0xff] }
  0x68   : > { %635 = vadd.xlane.f32.xlu0 %v634_v1 }
  0x6d   : > { %v1890_v3 = vpop.eup %1889 }
  0x6e   : > { %v638_v4 = vmul.f32 32.0, %v1890_v3  ;;  %vm642_vm1 = vweird.f32 %v1890_v3 }
  0x70   : > { %v639_v5 = vsub.f32 1.0, %v638_v4 }
  0x72   : > { %v640_v6 = vmul.f32 %v1890_v3, %v639_v5 }
  0x74   : > { %v641_v7 = vadd.f32 %v1890_v3, %v640_v6 }
  0x76   : > { %v643_v8 = vsel %vm642_vm1, %v1890_v3, %v641_v7 }
  0xdb   : > { %v636_v9 = vpop.xlane.xlu0 %635 }
  0xdc   : > { %v644_v10 = vmul.f32 %v643_v8, %v636_v9 }
  0xde   : > { %v645_v11 = vsub.f32 %v630_v0, %v644_v10 }
  0xe0   : > { %v646_v12 = vmul.f32 %v645_v11, %v645_v11 }
  0xe2   : > { %v647_v13 = vsel %vm633_vm0, %v646_v12, 0.0 }
  0xe3   : > { %648 = vadd.xlane.f32.xlu0 %v647_v13 }
 0x156   : > { %v649_v14 = vpop.xlane.xlu0 %648 }
 0x157   : > { %v650_v15 = vmul.f32 %v649_v14, %v643_v8 }
 0x159   : > { %v651_v16 = vadd.f32 1e-12, %v650_v15 }
 0x15b   : > { %1891 = vrsqrt.f32 %v651_v16  ;;  %vm658_vm3 = vweird.f32 %v651_v16 }
 0x161   : > { %v1892_v17 = vpop.eup %1891 }
 0x162   : > { %v653_v18 = vmul.f32 %v1892_v17, %v651_v16  ;;  %vm659_vm2 = vweird.f32 %v1892_v17 }
 0x163   : > { %vm660_vm4 = vmor %vm658_vm3, %vm659_vm2 }
 0x164   : > { %v654_v19 = vmul.f32 %v1892_v17, %v653_v18 }
 0x166   : > { %v655_v20 = vmul.f32 0.5, %v654_v19 }
 0x168   : > { %v656_v21 = vsub.f32 1.5, %v655_v20 }
 0x16a   : > { %v657_v22 = vmul.f32 %v1892_v17, %v656_v21 }
 0x16c   : > { %v661_v24 = vsel %vm660_vm4, %v1892_v17, %v657_v22 }
 0x16d   : > { %v662_v26 = vmul.f32 %v661_v24, %v645_v11 }
 0x16f   : > { %v666_v27 = vmul.f32 %v1887_v23, %v662_v26 }
 0x171   : > { %v670_v28 = vadd.f32 %v1888_v25, %v666_v27 }
 0x173   : > { %671 = vst.msk [vmem:[#allocation2] sm:$0xff] %vm633_vm0, %v670_v28 }
 0x174 PF: > { %v1732_v29 = vld [vmem:[%s2477_s6 + $0x8] sm:$0xff]  ;;  %v1731_v30 = vld [vmem:[%s2477_s6] sm:$0xff]  ;;  %vm695_vm5 = vcmask 261120   ;;  %s2847_s23 = scalar_lea.vmem %s2785_s5, %s2463_s22  ;;  %s2211_s9 = smov 112   ;;  %v2214_v39 = vmov 1983009808  }
 0x175   : > { %705 = vmatpush.bf16.msra.mxu0 %v1732_v29  ;;  %v1903_v33 = vld [vmem:[%s2847_s23] ss:$0 sm:$0xff]  ;;  %s2212_s6 = smov 64   ;;  %s2213_s30 = smov 96   ;;  %v720_v40 = vunpack.c.l.s4 %v2214_v39  ;;  %vm717_vm6 = vcmask 1047556   ;;  %vm1076_vm7 = vcmask 1043456  }
 0x176   : > { %v2215_v46 = vmov 1934713408   ;;  %vm1009_vm8 = vcmask 130048   ;;  %s2848_s19 = scalar_lea.vmem %s2781_s1, %s2460_s3  ;;  %vm1048_vm9 = vcmask 64512   ;;  %vm1355_vm14 = vcmask 523264   ;;  %p1713_p8 = scmp.ge.s32.totalorder %s2186_s14, 1 }
 0x177   : > { %v2531_v41 = vunpack.c.0.s8 %v720_v40  ;;  %v742_v47 = vunpack.c.l.s4 %v2215_v46 }
 0x179   : > { %706 = vmatpush.bf16.msra.mxu0 %v1731_v30  ;;  %v2540_v60 = vunpack.c.0.s8 %v742_v47 }
 0x17a   : > { %v2521_v31 = vld [vmem:[#allocation2] sm:$0xff] }
 0x17b   : > { %v673_v32 = vpack.c.bf16 %v2521_v31, %v2521_v31 }
 0x17d   : > { %1673 = vmatmul.msk.bf16.vlgmr.msra.gmra.mxu0 %vm695_vm5, %v673_v32 }
 0x1fa   : > { %v708_v34 = vpop.f32.mrf.mxu0 }
 0x1fb   : > { %v709_v35 = vadd.f32 %v1903_v33, %v708_v34 }
 0x1fd   : > { %713 = vrot.lane.b32.xlu0 %v709_v35, %s2211_s9  ;;  %v716_v45 = vrot.slane %v709_v35, 4  ;;  %v722_v52 = vperm.slane %v709_v35, %v2531_v41 }
 0x1ff   : > { %v718_v59 = vsel %vm717_vm6, 0.0, %v716_v45  ;;  %v739_v8 = vrot.slane %v722_v52, 4 }
 0x200   : > { %v726_v5 = vperm.slane %v718_v59, %v2531_v41 }
 0x202   : > { %v710_v36 = vpop.f32.mrf.mxu0  ;;  %v751_v22 = vrot.slane %v726_v5, 4 }
 0x26f   : > { %v714_v37 = vpop.permute.xlu0 %713 }
 0x270   : > { %v1898_v38 = vpack.i.bf16 %v714_v37, %v709_v35  ;;  %v727_v53 = vrot.slane %v714_v37, 4  ;;  %v732_v54 = vperm.slane %v714_v37, %v2531_v41 }
 0x272   : > { %1899 = vrot.lane.b32.xlu2 %v1898_v38, %s2212_s6  ;;  %1894 = vrot.lane.b32.xlu0 %v1898_v38, %s2213_s30  ;;  %v728_v6 = vsel %vm717_vm6, 0.0, %v727_v53  ;;  %v737_v7 = vrot.slane %v732_v54, 4  ;;  %v740_v15 = vsel %vm717_vm6, %v732_v54, %v739_v8 }
 0x273   : > { %v736_v17 = vperm.slane %v728_v6, %v2531_v41  ;;  %v748_v24 = vperm.slane %v740_v15, %v2540_v60 }
 0x274   : > { %v738_v21 = vsel %vm717_vm6, %v737_v7, %v722_v52 }
 0x275   : > { %v2565_v30 = vperm.slane %v738_v21, %v2540_v60  ;;  %v749_v32 = vrot.slane %v736_v17, 4  ;;  %v752_v33 = vsel %vm717_vm6, %v736_v17, %v751_v22  ;;  %v2572_v39 = vrot.slane %v748_v24, 4 }
 0x2cc   : > { %v1900_v42 = vpop.permute.xlu2 %1899 }
 0x2cd   : > { %v1902_v43 = vunpack.i.h.bf16 %v1900_v42  ;;  %v1901_v44 = vunpack.i.l.bf16 %v1900_v42  ;;  %v760_v42 = vperm.slane %v752_v33, %v2540_v60 }
 0x2cf   : > { %v923_v48 = vrot.slane %v1902_v43, 4  ;;  %v928_v49 = vperm.slane %v1902_v43, %v2531_v41  ;;  %v913_v50 = vrot.slane %v1901_v44, 4  ;;  %v918_v51 = vperm.slane %v1901_v44, %v2531_v41 }
 0x2d0   : > { %v750_v44 = vsel %vm717_vm6, %v749_v32, %v726_v5  ;;  %v767_v53 = vrot.slane %v760_v42, 4 }
 0x2d1   : > { %v924_v55 = vsel %vm717_vm6, 0.0, %v923_v48  ;;  %v933_v56 = vrot.slane %v928_v49, 4  ;;  %v914_v57 = vsel %vm717_vm6, 0.0, %v913_v50  ;;  %v935_v58 = vrot.slane %v918_v51, 4 }
 0x2d2   : > { %v932_v61 = vperm.slane %v924_v55, %v2531_v41  ;;  %v922_v62 = vperm.slane %v914_v57, %v2531_v41  ;;  %v761_v48 = vrot.slane %v2565_v30, 4  ;;  %v756_v52 = vperm.slane %v750_v44, %v2540_v60 }
 0x2d3   : > { %v934_v63 = vsel %vm717_vm6, %v933_v56, %v918_v51  ;;  %v936_v0 = vsel %vm717_vm6, %v928_v49, %v935_v58  ;;  %v764_v49 = vsel %vm717_vm6, 0.0, %v2572_v39 }
 0x2d4   : > { %v945_v1 = vrot.slane %v932_v61, 4  ;;  %v940_v2 = vperm.slane %v934_v63, %v2540_v60  ;;  %v944_v3 = vperm.slane %v936_v0, %v2540_v60  ;;  %v947_v4 = vrot.slane %v922_v62, 4 }
 0x2d5   : > { %v762_v58 = vsel %vm717_vm6, 0.0, %v761_v48  ;;  %v774_v59 = vrot.slane %v764_v49, 4 }
 0x2d6   : > { %v946_v9 = vsel %vm717_vm6, %v945_v1, %v922_v62  ;;  %v948_v10 = vsel %vm717_vm6, %v932_v61, %v947_v4  ;;  %v957_v11 = vrot.slane %v940_v2, 4  ;;  %v959_v12 = vrot.slane %v944_v3, 4 }
 0x2d7   : > { %v952_v13 = vperm.slane %v946_v9, %v2540_v60  ;;  %v956_v14 = vperm.slane %v948_v10, %v2540_v60  ;;  %v765_v3 = vrot.slane %v756_v52, 4  ;;  %v768_v4 = vsel %vm717_vm6, 0.0, %v767_v53 }
 0x2d8   : > { %v960_v16 = vsel %vm717_vm6, 0.0, %v959_v12  ;;  %v958_v23 = vsel %vm717_vm6, 0.0, %v957_v11  ;;  %v965_v26 = vsel %vm717_vm6, %v959_v12, %v940_v2  ;;  %v775_v24 = vsel %vm717_vm6, %v774_v59, %v762_v58 }
 0x2d9   : > { %v961_v18 = vrot.slane %v952_v13, 4  ;;  %v963_v19 = vrot.slane %v956_v14, 4  ;;  %v970_v20 = vrot.slane %v960_v16, 4  ;;  %v969_v35 = vperm.slane %v965_v26, %v2531_v41 }
 0x2da   : > { %v785_v14 = vrot.slane %v768_v4, 4 }
 0x2db   : > { %v964_v25 = vsel %vm717_vm6, 0.0, %v963_v19  ;;  %v971_v27 = vsel %vm717_vm6, %v970_v20, %v958_v23  ;;  %v962_v34 = vsel %vm717_vm6, 0.0, %v961_v18  ;;  %v976_v36 = vsel %vm717_vm6, %v963_v19, %v952_v13 }
 0x2dc   : > { %v981_v28 = vrot.slane %v964_v25, 4  ;;  %v975_v29 = vperm.slane %v971_v27, %v2531_v41  ;;  %v980_v45 = vperm.slane %v976_v36, %v2531_v41  ;;  %v766_v23 = vsel %vm717_vm6, 0.0, %v765_v3 }
 0x2de   : > { %v982_v37 = vsel %vm717_vm6, %v981_v28, %v962_v34  ;;  %v987_v38 = vrot.slane %v975_v29, 4  ;;  %v786_v34 = vsel %vm717_vm6, %v785_v14, %v766_v23 }
 0x2df   : > { %v986_v40 = vperm.slane %v982_v37, %v2531_v41 }
 0x2e0   : > { %v988_v43 = vsel %vm717_vm6, %v987_v38, %v969_v35  ;;  %v779_v38 = vperm.slane %v775_v24, %v2531_v41 }
 0x2e1   : > { %v992_v46 = vperm.slane %v988_v43, %v2540_v60  ;;  %v993_v47 = vrot.slane %v986_v40, 4 }
 0x2e3   : > { %v994_v50 = vsel %vm717_vm6, %v993_v47, %v980_v45  ;;  %v1001_v51 = vrot.slane %v992_v46, 4  ;;  %v790_v45 = vperm.slane %v786_v34, %v2531_v41 }
 0x2e4   : > { %v1895_v54 = vpop.permute.xlu0 %1894  ;;  %v998_v55 = vperm.slane %v994_v50, %v2540_v60  ;;  %v780_v50 = vsel %vm717_vm6, %v767_v53, %v756_v52 }
 0x2e5   : > { %v1897_v56 = vunpack.i.h.bf16 %v1895_v54  ;;  %v1896_v57 = vunpack.i.l.bf16 %v1895_v54 }
 0x2e6   : > { %v999_v61 = vrot.slane %v998_v55, 4  ;;  %v1002_v62 = vsel %vm717_vm6, %v998_v55, %v1001_v51  ;;  %v791_v51 = vrot.slane %v779_v38, 4 }
 0x2e7   : > { %v825_v63 = vrot.slane %v1897_v56, 4  ;;  %v830_v0 = vperm.slane %v1897_v56, %v2531_v41  ;;  %v815_v1 = vrot.slane %v1896_v57, 4  ;;  %v820_v2 = vperm.slane %v1896_v57, %v2531_v41 }
 0x2e8   : > { %v1000_v5 = vsel %vm717_vm6, %v999_v61, %v992_v46  ;;  %v1004_v6 = vpack.c.bf16 %v1002_v62, %v1002_v62  ;;  %v769_v46 = vsel %vm717_vm6, %v2572_v39, %v2565_v30  ;;  %v797_v30 = vrot.slane %v790_v45, 4 }
 0x2e9   : > { %v826_v7 = vsel %vm717_vm6, 0.0, %v825_v63  ;;  %v835_v8 = vrot.slane %v830_v0, 4  ;;  %v816_v9 = vsel %vm717_vm6, 0.0, %v815_v1  ;;  %v837_v10 = vrot.slane %v820_v2, 4 }
 0x2ea   : > { %v834_v11 = vperm.slane %v826_v7, %v2531_v41  ;;  %v824_v12 = vperm.slane %v816_v9, %v2531_v41  ;;  %v1003_v13 = vpack.c.bf16 %v1000_v5, %v1000_v5  ;;  %v1097_v22 = vsel %vm1076_vm7, %v1004_v6, 0 }
 0x2eb   : > { %v836_v15 = vsel %vm717_vm6, %v835_v8, %v820_v2  ;;  %v838_v16 = vsel %vm717_vm6, %v830_v0, %v837_v10  ;;  %v773_v59 = vperm.slane %v769_v46, %v2531_v41  ;;  %v784_v61 = vperm.slane %v780_v50, %v2531_v41 }
 0x2ec   : > { %v847_v17 = vrot.slane %v834_v11, 4  ;;  %v842_v18 = vperm.slane %v836_v15, %v2540_v60  ;;  %v846_v19 = vperm.slane %v838_v16, %v2540_v60  ;;  %v849_v20 = vrot.slane %v824_v12, 4 }
 0x2ed   : > { %v1078_v21 = vsel %vm1076_vm7, %v1003_v13, 0  ;;  %v792_v63 = vsel %vm717_vm6, %v791_v51, %v773_v59  ;;  %v798_v2 = vsel %vm717_vm6, %v797_v30, %v784_v61  ;;  %v1734_v51 = vld [vmem:[%s2482_s13 + $0x8] sm:$0xff] }
 0x2ee   : > { %v848_v25 = vsel %vm717_vm6, %v847_v17, %v824_v12  ;;  %v850_v26 = vsel %vm717_vm6, %v834_v11, %v849_v20  ;;  %v859_v27 = vrot.slane %v842_v18, 4  ;;  %v861_v28 = vrot.slane %v846_v19, 4  ;;  %1087 = vmatpush.bf16.msra.mxu3 %v1078_v21  ;;  %v1904_v19 = vld [vmem:[%s2848_s19] ss:$0 sm:$0xff]  ;;  %1234 = vmatpush.bf16.msrb.mxu0 %v1734_v51 }
 0x2ef   : > { %v854_v29 = vperm.slane %v848_v25, %v2540_v60  ;;  %v858_v32 = vperm.slane %v850_v26, %v2540_v60  ;;  %v796_v4 = vperm.slane %v792_v63, %v2540_v60  ;;  %v802_v7 = vperm.slane %v798_v2, %v2540_v60 }
 0x2f0   : > { %v862_v33 = vsel %vm717_vm6, 0.0, %v861_v28  ;;  %v860_v40 = vsel %vm717_vm6, 0.0, %v859_v27  ;;  %v867_v43 = vsel %vm717_vm6, %v861_v28, %v842_v18  ;;  %v2217_v51 = vmov 32.0  }
 0x2f1   : > { %v863_v35 = vrot.slane %v854_v29, 4  ;;  %v865_v36 = vrot.slane %v858_v32, 4  ;;  %v872_v37 = vrot.slane %v862_v33, 4  ;;  %v871_v54 = vperm.slane %v867_v43, %v2531_v41 }
 0x2f2   : > { %1106 = vmatpush.bf16.msrb.mxu3 %v1097_v22  ;;  %v805_v10 = vrot.slane %v796_v4, 4  ;;  %v803_v13 = vrot.slane %v802_v7, 4 }
 0x2f3   : > { %v866_v42 = vsel %vm717_vm6, 0.0, %v865_v36  ;;  %v873_v44 = vsel %vm717_vm6, %v872_v37, %v860_v40  ;;  %v864_v49 = vsel %vm717_vm6, 0.0, %v863_v35  ;;  %v878_v55 = vsel %vm717_vm6, %v865_v36, %v854_v29 }
 0x2f4   : > { %v883_v47 = vrot.slane %v866_v42, 4  ;;  %v877_v48 = vperm.slane %v873_v44, %v2531_v41  ;;  %v882_v62 = vperm.slane %v878_v55, %v2531_v41  ;;  %v806_v15 = vsel %vm717_vm6, %v802_v7, %v805_v10 }
 0x2f5   : > { %v804_v16 = vsel %vm717_vm6, %v803_v13, %v796_v4  ;;  %v808_v17 = vpack.c.bf16 %v806_v15, %v806_v15 }
 0x2f6   : > { %v884_v56 = vsel %vm717_vm6, %v883_v47, %v864_v49  ;;  %v889_v57 = vrot.slane %v877_v48, 4  ;;  %v807_v18 = vpack.c.bf16 %v804_v16, %v804_v16 }
 0x2f7   : > { %v888_v58 = vperm.slane %v884_v56, %v2531_v41  ;;  %v1733_v56 = vld [vmem:[%s2482_s13] sm:$0xff]  ;;  %s2216_s13 = smov 16  }
 0x2f8   : > { %v890_v39 = vsel %vm717_vm6, %v889_v57, %v871_v54  ;;  %1235 = vmatpush.bf16.msrb.mxu0 %v1733_v56 }
 0x2f9   : > { %v894_v52 = vperm.slane %v890_v39, %v2540_v60  ;;  %v895_v53 = vrot.slane %v888_v58, 4 }
 0x2fb   : > { %v896_v0 = vsel %vm717_vm6, %v895_v53, %v882_v62  ;;  %v903_v1 = vrot.slane %v894_v52, 4 }
 0x2fc   : > { %v900_v3 = vperm.slane %v896_v0, %v2540_v60 }
 0x2fe   : > { %v904_v5 = vsel %vm717_vm6, %v900_v3, %v903_v1  ;;  %v901_v6 = vrot.slane %v900_v3, 4 }
 0x2ff   : > { %v906_v8 = vpack.c.bf16 %v904_v5, %v904_v5 }
 0x300   : > { %v902_v9 = vsel %vm717_vm6, %v901_v6, %v894_v52 }
 0x301   : > { %v1033_v11 = vsel %vm1009_vm8, %v906_v8, 0  ;;  %v905_v12 = vpack.c.bf16 %v902_v9, %v902_v9 }
 0x302   : > { %1042 = vmatpush.bf16.xpose.msra.mxu2 %v1033_v11 }
 0x303   : > { %v1014_v14 = vsel %vm1009_vm8, %v905_v12, 0 }
 0x304   : > { %1023 = vmatpush.bf16.xpose.msra.mxu1 %v1014_v14 }
 0x309   : > { %1675 = vmatmul.msk.bf16.vlgmr.msra.gmra.mxu2 %vm1009_vm8, %v808_v17 }
 0x30b   : > { %1674 = vmatmul.msk.bf16.vlgmr.msra.gmra.mxu1 %vm1009_vm8, %v807_v18 }
 0x388   : > { %v1025_v20 = vpop.f32.mrf.mxu1 }
 0x389   : > { %v1026_v21 = vadd.f32 %v1904_v19, %v1025_v20 }
 0x38b   : > { %v1049_v22 = vsel %vm1048_vm9, %v1026_v21, -inf }
 0x38c   : > { %v1044_v23 = vpop.f32.mrf.mxu2  ;;  %1050 = vmax.xlane.f32.xlu1 %v1049_v22 }
 0x38d   : > { %v1045_v24 = vadd.f32 %v1904_v19, %v1044_v23 }
 0x38f   : > { %v1052_v26 = vsel %vm1048_vm9, %v1045_v24, -inf }
 0x390   : > { %v1027_v25 = vpop.f32.mrf.mxu1 }
 0x394   : > { %v1046_v27 = vpop.f32.mrf.mxu2  ;;  %1053 = vmax.xlane.f32.xlu1 %v1052_v26 }
 0x3ff   : > { %v1051_v28 = vpop.xlane.xlu1 %1050 }
 0x400   : > { %v1055_v29 = vsub.f32 %v1026_v21, %v1051_v28 }
 0x402   : > { %v1057_v32 = vmul.f32 1.442695, %v1055_v29 }
 0x404   : > { %1906 = vpow2.f32 %v1057_v32 }
 0x407   : > { %v1054_v33 = vpop.xlane.xlu1 %1053 }
 0x408   : > { %v1056_v34 = vsub.f32 %v1045_v24, %v1054_v33 }
 0x40a   : > { %v1907_v35 = vpop.eup %1906  ;;  %v1059_v36 = vmul.f32 1.442695, %v1056_v34 }
 0x40b   : > { %v1061_v37 = vsel %vm1048_vm9, %v1907_v35, 0.0 }
 0x40c   : > { %1908 = vpow2.f32 %v1059_v36  ;;  %1062 = vadd.xlane.f32.xlu2 %v1061_v37 }
 0x412   : > { %v1909_v38 = vpop.eup %1908 }
 0x413   : > { %v1064_v40 = vsel %vm1048_vm9, %v1909_v38, 0.0 }
 0x414   : > { %1065 = vadd.xlane.f32.xlu0 %v1064_v40 }
 0x47f   : > { %v1063_v42 = vpop.xlane.xlu2 %1062 }
 0x480   : > { %1910 = vrcp.f32 %v1063_v42 }
 0x486   : > { %v1911_v43 = vpop.eup %1910 }
 0x487   : > { %v1069_v44 = vmul.f32 %v1911_v43, %v1907_v35  ;;  %v1066_v45 = vpop.xlane.xlu0 %1065 }
 0x488   : > { %1912 = vrcp.f32 %v1066_v45 }
 0x489   : > { %v1071_v46 = vpack.c.bf16 %v1069_v44, %v1069_v44  ;;  %1914 = vrcp.f32 %v2217_v51 }
 0x48b   : > { %1676 = vmatmul.msk.bf16.vlgmr.msra.gmra.mxu3 %vm1048_vm9, %v1071_v46 }
 0x48e   : > { %v1913_v47 = vpop.eup %1912 }
 0x48f   : > { %v1070_v48 = vmul.f32 %v1913_v47, %v1909_v38 }
 0x491   : > { %v1072_v49 = vpack.c.bf16 %v1070_v48, %v1070_v48 }
 0x49b   : > { %1677 = vmatmul.msk.bf16.vlgmr.msrb.gmra.mxu3 %vm1048_vm9, %v1072_v49 }
 0x50e   : > { %v1089_v50 = vpop.f32.mrf.mxu3 }
 0x50f   : > { %v1112_v55 = vrot.slane %v1089_v50, 4  ;;  %v1117_v58 = vperm.slane %v1089_v50, %v2531_v41 }
 0x511   : > { %v1113_v57 = vsel %vm717_vm6, 0.0, %v1112_v55  ;;  %v1134_v39 = vrot.slane %v1117_v58, 4 }
 0x512   : > { %v1121_v59 = vperm.slane %v1113_v57, %v2531_v41 }
 0x514   : > { %v1146_v0 = vrot.slane %v1121_v59, 4 }
 0x516   : > { %v1091_v54 = vpop.f32.mrf.mxu3 }
 0x517   : > { %v1915_v54 = vpop.eup %1914 }
 0x518   : > { %v1246_v55 = vmul.f32 32.0, %v1915_v54  ;;  %vm1250_vm10 = vweird.f32 %v1915_v54 }
 0x51a   : > { %v1247_v56 = vsub.f32 1.0, %v1246_v55 }
 0x51c   : > { %v1248_v57 = vmul.f32 %v1915_v54, %v1247_v56 }
 0x51e   : > { %v1108_v30 = vpop.f32.mrf.mxu3 }
 0x51f   : > { %v1122_v61 = vrot.slane %v1108_v30, 4  ;;  %v1127_v62 = vperm.slane %v1108_v30, %v2531_v41 }
 0x521   : > { %v1123_v52 = vsel %vm717_vm6, 0.0, %v1122_v61  ;;  %v1132_v53 = vrot.slane %v1127_v62, 4  ;;  %v1135_v63 = vsel %vm717_vm6, %v1127_v62, %v1134_v39 }
 0x522   : > { %v1131_v1 = vperm.slane %v1123_v52, %v2531_v41  ;;  %v1143_v2 = vperm.slane %v1135_v63, %v2540_v60  ;;  %v1736_v52 = vld [vmem:[%s2487_s16 + $0x8] sm:$0xff] }
 0x523   : > { %v1133_v3 = vsel %vm717_vm6, %v1132_v53, %v1117_v58  ;;  %v1249_v58 = vadd.f32 %v1915_v54, %v1248_v57  ;;  %1305 = vmatpush.bf16.msrb.mxu1 %v1736_v52  ;;  %v1735_v53 = vld [vmem:[%s2487_s16] sm:$0xff] }
 0x524   : > { %v1139_v4 = vperm.slane %v1133_v3, %v2540_v60  ;;  %v1144_v5 = vrot.slane %v1131_v1, 4  ;;  %v1147_v6 = vsel %vm717_vm6, %v1131_v1, %v1146_v0  ;;  %v1158_v7 = vrot.slane %v1143_v2, 4 }
 0x525   : > { %v1155_v8 = vperm.slane %v1147_v6, %v2540_v60 }
 0x526   : > { %v1145_v9 = vsel %vm717_vm6, %v1144_v5, %v1121_v59  ;;  %v1156_v10 = vrot.slane %v1139_v4, 4  ;;  %v1159_v11 = vsel %vm717_vm6, 0.0, %v1158_v7  ;;  %v1110_v12 = vpop.f32.mrf.mxu3  ;;  %v1164_v19 = vsel %vm717_vm6, %v1158_v7, %v1139_v4 }
 0x527   : > { %v1151_v13 = vperm.slane %v1145_v9, %v2540_v60  ;;  %v1162_v14 = vrot.slane %v1155_v8, 4  ;;  %v1169_v15 = vrot.slane %v1159_v11, 4  ;;  %v1168_v24 = vperm.slane %v1164_v19, %v2531_v41  ;;  %1306 = vmatpush.bf16.msrb.mxu1 %v1735_v53  ;;  %v1905_v19 = vld [vmem:[%s2446_s11] ss:$0 sm:$0xff] }
 0x528   : > { %v1157_v16 = vsel %vm717_vm6, 0.0, %v1156_v10  ;;  %v2696_v59 = vsel %vm1250_vm10, %v1915_v54, %v1249_v58 }
 0x529   : > { %v1160_v17 = vrot.slane %v1151_v13, 4  ;;  %v1163_v18 = vsel %vm717_vm6, 0.0, %v1162_v14  ;;  %v1170_v20 = vsel %vm717_vm6, %v1169_v15, %v1157_v16  ;;  %v1175_v25 = vsel %vm717_vm6, %v1162_v14, %v1151_v13  ;;  %v1740_v15 = vld [vmem:[%s2493_s28 + $0x18] sm:$0xff]  ;;  %v1739_v16 = vld [vmem:[%s2493_s28 + $0x10] sm:$0xff] }
 0x52a   : > { %v1180_v21 = vrot.slane %v1163_v18, 4  ;;  %v1174_v22 = vperm.slane %v1170_v20, %v2531_v41  ;;  %v1179_v32 = vperm.slane %v1175_v25, %v2531_v41  ;;  %1363 = vmatpush.bf16.msrb.mxu2 %v1740_v15  ;;  %v1737_v18 = vld [vmem:[%s2493_s28] sm:$0xff] }
 0x52b   : > { %v1161_v23 = vsel %vm717_vm6, 0.0, %v1160_v17  ;;  %v1738_v17 = vld [vmem:[%s2493_s28 + $0x8] sm:$0xff] }
 0x52c   : > { %v1181_v26 = vsel %vm717_vm6, %v1180_v21, %v1161_v23  ;;  %v1186_v27 = vrot.slane %v1174_v22, 4 }
 0x52d   : > { %v1185_v28 = vperm.slane %v1181_v26, %v2531_v41  ;;  %v2691_v41 = vld [vmem:[%s2499_s29] sm:$0x3f] }
 0x52e   : > { %v1187_v29 = vsel %vm717_vm6, %v1186_v27, %v1168_v24  ;;  %v1212_v46 = vperm.slane %v2691_v41, 0  ;;  %v1271_v8 = vperm.slane %v2691_v41, 2  ;;  %v1273_v11 = vperm.slane %v2691_v41, 3  ;;  %1364 = vmatpush.bf16.msrb.mxu2 %v1739_v16 }
 0x52f   : > { %v1191_v33 = vperm.slane %v1187_v29, %v2540_v60  ;;  %v1192_v34 = vrot.slane %v1185_v28, 4  ;;  %v1395_v58 = vperm.slane %v2691_v41, 4 }
 0x531   : > { %v1193_v35 = vsel %vm717_vm6, %v1192_v34, %v1179_v32  ;;  %v1200_v36 = vrot.slane %v1191_v33, 4 }
 0x532   : > { %v1197_v37 = vperm.slane %v1193_v35, %v2540_v60  ;;  %1365 = vmatpush.bf16.msrb.mxu2 %v1738_v17  ;;  %v1330_v35 = vperm.slane %v2691_v41, 1 }
 0x534   : > { %v1201_v38 = vsel %vm717_vm6, %v1197_v37, %v1200_v36  ;;  %v1198_v40 = vrot.slane %v1197_v37, 4 }
 0x535   : > { %1203 = vrot.lane.b32.xlu1 %v1201_v38, %s2216_s13 }
 0x536   : > { %v1199_v42 = vsel %vm717_vm6, %v1198_v40, %v1191_v33  ;;  %1366 = vmatpush.bf16.msrb.mxu2 %v1737_v18 }
 0x5a7   : > { %v1204_v43 = vpop.permute.xlu1 %1203 }
 0x5a8   : > { %v1206_v44 = vsel %vm1009_vm8, %v1199_v42, %v1204_v43 }
 0x5a9   : > { %v1207_v45 = vpack.c.bf16 %v1206_v44, %v1206_v44 }
 0x5ab   : > { %1686 = vmatmul.msk.bf16.vlgmr.msrb.gmra.mxu0 %vm695_vm5, %v1207_v45 }
 0x628   : > { %v1237_v47 = vpop.f32.mrf.mxu0 }
 0x629   : > { %v1238_v48 = vadd.f32 %v1237_v47, %v1212_v46 }
 0x62b   : > { %v1241_v60 = vadd.f32 %v1238_v48, %v2521_v31 }
 0x62d   : > { %v1242_v49 = vsel %vm695_vm5, %v1241_v60, 0.0 }
 0x62e   : > { %1243 = vadd.xlane.f32.xlu1 %v1242_v49 }
 0x630   : > { %v1239_v50 = vpop.f32.mrf.mxu0 }
 0x6a1   : > { %v1244_v30 = vpop.xlane.xlu1 %1243 }
 0x6a2   : > { %v1252_v39 = vmul.f32 %v2696_v59, %v1244_v30 }
 0x6a4   : > { %v1253_v31 = vsub.f32 %v1241_v60, %v1252_v39  ;;  %v1397_v39 = vperm.slane %v2691_v41, 5 }
 0x6a6   : > { %v1254_v61 = vmul.f32 %v1253_v31, %v1253_v31 }
 0x6a8   : > { %v1255_v62 = vsel %vm695_vm5, %v1254_v61, 0.0 }
 0x6a9   : > { %1256 = vadd.xlane.f32.xlu2 %v1255_v62 }
 0x71c   : > { %v1257_v63 = vpop.xlane.xlu2 %1256 }
 0x71d   : > { %v1258_v0 = vmul.f32 %v1257_v63, %v2696_v59 }
 0x71f   : > { %v1259_v1 = vadd.f32 1e-12, %v1258_v0 }
 0x721   : > { %1916 = vrsqrt.f32 %v1259_v1  ;;  %vm1266_vm12 = vweird.f32 %v1259_v1 }
 0x727   : > { %v1917_v2 = vpop.eup %1916 }
 0x728   : > { %v1261_v3 = vmul.f32 %v1917_v2, %v1259_v1  ;;  %vm1267_vm11 = vweird.f32 %v1917_v2 }
 0x729   : > { %vm1268_vm13 = vmor %vm1266_vm12, %vm1267_vm11 }
 0x72a   : > { %v1262_v4 = vmul.f32 %v1917_v2, %v1261_v3 }
 0x72c   : > { %v1263_v5 = vmul.f32 0.5, %v1262_v4 }
 0x72e   : > { %v1264_v6 = vsub.f32 1.5, %v1263_v5 }
 0x730   : > { %v1265_v7 = vmul.f32 %v1917_v2, %v1264_v6 }
 0x732   : > { %v1269_v9 = vsel %vm1268_vm13, %v1917_v2, %v1265_v7 }
 0x733   : > { %v1270_v10 = vmul.f32 %v1269_v9, %v1253_v31 }
 0x735   : > { %v1272_v12 = vmul.f32 %v1271_v8, %v1270_v10 }
 0x737   : > { %v1274_v13 = vadd.f32 %v1273_v11, %v1272_v12 }
 0x739   : > { %v1275_v14 = vpack.c.bf16 %v1274_v13, %v1274_v13 }
 0x73b   : > { %1695 = vmatmul.msk.bf16.vlgmr.msrb.gmra.mxu1 %vm695_vm5, %v1275_v14 }
 0x7b8   : > { %v1308_v20 = vpop.f32.mrf.mxu1 }
 0x7b9   : > { %v1309_v21 = vadd.f32 %v1905_v19, %v1308_v20 }
 0x7bb   : > { %v1312_v22 = vmul.f32 %v1309_v21, %v1309_v21 }
 0x7bd   : > { %v1313_v23 = vmul.f32 %v1312_v22, %v1309_v21 }
 0x7bf   : > { %v1314_v24 = vmul.f32 0.044715, %v1313_v23 }
 0x7c0   : > { %v1310_v25 = vpop.f32.mrf.mxu1 }
 0x7c1   : > { %v1315_v26 = vadd.f32 %v1314_v24, %v1309_v21 }
 0x7c3   : > { %v1316_v27 = vmul.f32 0.7978846, %v1315_v26 }
 0x7c5   : > { %1918 = vtanh.f32 %v1316_v27 }
 0x7cb   : > { %v1919_v28 = vpop.eup %1918 }
 0x7cc   : > { %v1318_v29 = vadd.f32 1.0, %v1919_v28 }
 0x7ce   : > { %v1319_v32 = vmul.f32 0.5, %v1318_v29 }
 0x7d0   : > { %v1320_v33 = vmul.f32 %v1319_v32, %v1309_v21 }
 0x7d2   : > { %v1321_v34 = vpack.c.bf16 %v1320_v33, %v1320_v33 }
 0x7d4   : > { %1712 = vmatmul.msk.bf16.vlgmr.msrb.gmra.mxu2 %vm1355_vm14, %v1321_v34 }
 0x857   : > { %v1368_v36 = vpop.f32.mrf.mxu2 }
 0x858   : > { %v1369_v37 = vadd.f32 %v1368_v36, %v1330_v35 }
 0x85a   : > { %v1372_v38 = vadd.f32 %v1369_v37, %v1274_v13 }
 0x85c   : > { %v1373_v40 = vsel %vm695_vm5, %v1372_v38, 0.0 }
 0x85d   : > { %1374 = vadd.xlane.f32.xlu2 %v1373_v40 }
 0x85f   : > { %v1370_v42 = vpop.f32.mrf.mxu2 }
 0x8d0   : > { %v1375_v43 = vpop.xlane.xlu2 %1374 }
 0x8d1   : > { %v1376_v44 = vmul.f32 %v1375_v43, %v2696_v59 }
 0x8d3   : > { %v1377_v45 = vsub.f32 %v1372_v38, %v1376_v44 }
 0x8d5   : > { %v1378_v46 = vmul.f32 %v1377_v45, %v1377_v45 }
 0x8d7   : > { %v1379_v47 = vsel %vm695_vm5, %v1378_v46, 0.0 }
 0x8d8   : > { %1380 = vadd.xlane.f32.xlu0 %v1379_v47 }
 0x94b   : > { %v1381_v48 = vpop.xlane.xlu0 %1380 }
 0x94c   : > { %v1382_v60 = vmul.f32 %v1381_v48, %v2696_v59 }
 0x94e   : > { %v1383_v49 = vadd.f32 1e-12, %v1382_v60 }
 0x950   : > { %1920 = vrsqrt.f32 %v1383_v49  ;;  %vm1390_vm0 = vweird.f32 %v1383_v49 }
 0x956   : > { %v1921_v50 = vpop.eup %1920 }
 0x957   : > { %v1385_v51 = vmul.f32 %v1921_v50, %v1383_v49  ;;  %vm1391_vm15 = vweird.f32 %v1921_v50 }
 0x958   : > { %vm1392_vm1 = vmor %vm1390_vm0, %vm1391_vm15 }
 0x959   : > { %v1386_v54 = vmul.f32 %v1921_v50, %v1385_v51 }
 0x95b   : > { %v1387_v55 = vmul.f32 0.5, %v1386_v54 }
 0x95d   : > { %v1388_v56 = vsub.f32 1.5, %v1387_v55 }
 0x95f   : > { %v1389_v57 = vmul.f32 %v1921_v50, %v1388_v56 }
 0x961   : > { %v1393_v30 = vsel %vm1392_vm1, %v1921_v50, %v1389_v57 }
 0x962   : > { %v1394_v31 = vmul.f32 %v1393_v30, %v1377_v45  ;;  %1402 = sbr.rel (%p1713_p8) target bundleno = 2409 (0x969), region = 96 }
 0x964   : > { %v1396_v61 = vmul.f32 %v1395_v58, %v1394_v31 }
 0x966   : > { %v1398_v62 = vadd.f32 %v1397_v39, %v1396_v61 }
 0x968   : > { %1403 = vst.msk [vmem:[#allocation2] sm:$0xff] %vm695_vm5, %v1398_v62 }
 0x969 PF: > { %p1714_p10 = scmp.ne.s32.totalorder %s2186_s14, 1 }
 0x96a   : > { %s2849_s11 = sld [smem:[#allocation43_spill]] (!%p1714_p10) }
 0x96b   : > { %1407 = sbr.rel (%p1714_p10) target bundleno = 2558 (0x9fe), region = 100 }
 0x970   : > { %v1742_v59 = vld [vmem:[#allocation10 + $0x8] sm:$0xff]  ;;  %v1741_v52 = vld [vmem:[#allocation10] sm:$0xff]  ;;  %v1408_v53 = vpack.c.bf16 %v1398_v62, %v1398_v62  ;;  %v1413_v41 = vld [vmem:[%s2849_s11] sm:$0x1] }
 0x971   : > { %1435 = vmatpush.bf16.msra.mxu0 %v1742_v59 }
 0x975   : > { %1436 = vmatpush.bf16.msra.mxu0 %v1741_v52 }
 0x978   : > { %1723 = vmatmul.msk.bf16.vlgmr.msra.gmra.mxu0 %vm695_vm5, %v1408_v53 }
 0x9f5   : > { %v1438_v63 = vpop.f32.mrf.mxu0 }
 0x9f6   : > { %v1439_v0 = vadd.f32 %v1438_v63, %v1413_v41 }
 0x9f8   : > { %1442 = vst [vmem:[%s2503_s8] sm:$0x1] %v1439_v0 }
 0x9fd   : > { %v1440_v1 = vpop.f32.mrf.mxu0 }
 0x9fe PF: > { %s2850_s28 = sld [smem:[#allocation44_spill]]  ;;  %s1454_s24 = sshll.u32 %s2503_s8, 4  ;;  %s1455_s24 = int_to_ptr.vmem [resolvable:$true] %s1454_s24 }
 0x9ff   : > { %s2853_s7 = sand.u32 1, %s2166_s26  }
 0xa00   : > { %s1444_s12 = scalar_lea.sflag [#allocation6], %s2853_s7 }
 0xa04   : > { %s2851_s0 = smov %s2850_s28  ;;  %s1452_s4 = scalar_lea.hbm %s2850_s28, %s2190_s15 }
 0xa05   : > { %s1456_s25 = sshll.u32 %s1452_s4, 4  ;;  %s2086_s6 = scalar_lea.hbm %s2851_s0, 2  ;;  %s1457_s25 = int_to_ptr.hbm [resolvable:$true] %s1456_s25 }
 0xa06   : > { %s2080_s10 = sshra.s32 %s1457_s25, 4  ;;  %s2081_s10 = int_to_ptr.hbm [resolvable:$true] %s2080_s10 }
 0xa07   : > { %s2082_s17 = scalar_lea.hbm %s2081_s10, 1  ;;  %p2087_p0 = scmp.lt.s32.totalorder %s2081_s10, %s2851_s0 }
 0xa08   : > { %p2083_p12 = scmp.ne.s32.totalorder %s2081_s10, %s2082_s17  ;;  %p2088_p1 = scmp.lt.s32.totalorder %s2086_s6, %s2082_s17 }
 0xa0a   : > { %p2084_p13 = pnand %p2083_p12, %p2359_p7  ;;  %p2089_p3 = por %p2088_p1, %p2087_p0 }
 0xa0c   : > { %p2085_p11 = pneg %p2084_p13 }
 0xa0e   : > { %p2090_p2 = pnand %p2089_p3, %p2085_p11 }
 0xa10   : > { %2093 = shalt.err (!%p2090_p2)
}
 0xa11   : > { %1757 = dma.vmem_to_hbm [thread:$0]  (%p2359_p7), %s1455_s24, 16, %s1457_s25, %s1444_s12  }
 0xa12 PF: > { %s2854_s15 = sld [smem:[#allocation22_spill]]  ;;  %p1784_p4 = scmp.ge.s32.totalorder %s2202_s18, 2 }
 0xa14   : > { %p1774_p5 = pnand %p1784_p4, %p2364_p9 }
 0xa16   : > { %p1775_p6 = pneg %p1774_p5 }
 0xa18   : > { %s1468_s21 = sand.u32 1, %s2854_s15  }
 0xa19   : > { %s1469_s19 = scalar_lea.sflag [#allocation6], %s1468_s21 }
 0xa1a   : > { %2157 = dma.done.wait (%p1775_p6), %s1469_s19, 16  }
 0xa1b   : > { %2159 = vsyncadd (%p1775_p6), %s1469_s19, 4294967280  ;;  %s28_s18 = sadd.s32 1, %s2202_s18   ;;  %s2856_s13 = sld [smem:[#allocation32_spill]] }
 0xa1c   : > { %p25_p8 = scmp.ge.s32.totalorder %s28_s18, 6   ;;  %s2857_s28 = sld [smem:[#allocation23_spill]] }
 0xa1d   : > { %s2858_s29 = sld [smem:[#allocation24_spill]]  ;;  %s2864_s25 = smov %s2166_s26 }
 0xa1e   : > { %s2859_s30 = sld [smem:[#allocation31_spill]]  ;;  %s2865_s26 = smov %s2170_s27 }
 0xa1f   : > { %s2860_s14 = sld [smem:[#allocation25_spill]]  ;;  %27 = sbr.rel (!%p25_p8) target bundleno = 22 (0x16), region = 162 }
 0xa20   : > { %s2861_s15 = sld [smem:[#allocation26_spill]] }
 0xa21   : > { %s2862_s16 = sld [smem:[#allocation29_spill]]  ;;  %s2866_s27 = smov %s2856_s13 }
 0xa22   : > { %s2863_s17 = sld [smem:[#allocation30_spill]] }
 0xa24   :  { %1474 = vsyncpa [#allocation5], 1 }
 0xa25   :  { %1476 = vsyncpa [#allocation5 + $0x1], 1 }
 0xa26   :  { %1477 = vsyncpa [#allocation8], 1 }
 0xa27   :  { %1478 = vsyncpa [#allocation6], 1 }
 0xa28   :  { %1480 = vsyncpa [#allocation6 + $0x1], 1 }
 0xa29   :  { %1481 = vsyncmov [#allocation3] }
 0xa2c   :  { %s1482_s11 = vpop.sfrf %1481 }
 0xa2d   :  { %p1726_p7 = scmp.ne.s32.totalorder %s1482_s11, 0 }
 0xa2f   :  { %1486 = shalt.err (%p1726_p7)  }

</bundles_post_ra>
